<compile_context>
chip_gen: v7x
topology: tpu7x:2x2x1
jax: 0.10.0
libtpu: 0.0.40
codegen_flags: <defaults>
</compile_context>

<pallas_src>
import functools

import numpy as np
import jax
import jax.numpy as jnp
from jax.experimental import pallas as pl
from jax.experimental.pallas import tpu as pltpu

# ---- InputProcessV2 dimensions ----
HAND_QPOS_DIM = 23
OBJ_POS_DIM = 3
OBJ_ORNT_DIM = 4
IN_FEAT_DIM = HAND_QPOS_DIM + OBJ_POS_DIM + OBJ_ORNT_DIM   # 30
NN_LATENTS = 256
HIDDEN_DIM = NN_LATENTS // 2                               # 128
NN_HISTORY = 20

MAX_BLOCK_BATCH = 512          # up to 10,240 rows per grid step for large B
CHUNK_ROWS_TARGET = 1280       # in-kernel row-chunk size target (bounds f32 intermediates)


# ------------------------------ kernel ------------------------------

def input_process_kernel(x_ref, w1_ref, b1_ref, w2_ref, b2_ref, out_ref,
                         *, n_chunks, chunk_rows):
    """x_ref: (rows, 30) f32; w* bf16; b* f32; out_ref: (rows, 256) bf16."""
    w1 = w1_ref[...]            # (30, 128)  bf16, resident across grid steps
    b1 = b1_ref[...]            # (1, 128)   f32
    w2 = w2_ref[...]            # (128, 256) bf16
    b2 = b2_ref[...]            # (1, 256)   f32

    def compute(x_f32):
        x = x_f32.astype(jnp.bfloat16)                                   # cast on-chip
        h = jnp.dot(x, w1, preferred_element_type=jnp.float32)           # (rows, 128) f32
        h = jnp.maximum(h + b1, 0.0).astype(jnp.bfloat16)
        o = jnp.dot(h, w2, preferred_element_type=jnp.float32)           # (rows, 256) f32
        return (o + b2).astype(out_ref.dtype)                            # bf16 store

    if n_chunks == 1:
        out_ref[...] = compute(x_ref[...])
    else:
        def body(c, carry):
            r0 = pl.multiple_of(c * chunk_rows, 8)   # chunk_rows % 8 == 0 by construction
            out_ref[pl.ds(r0, chunk_rows), :] = compute(x_ref[pl.ds(r0, chunk_rows), :])
            return carry
        jax.lax.fori_loop(0, n_chunks, body, None, unroll=True)


# ------------------------- tiling heuristics -------------------------

def _pick_block_batch(B):
    """Batch elements per grid step (static, chosen at trace time)."""
    if B <= 2:
        return B                        # single full-array block
    if B >= 2 * MAX_BLOCK_BATCH:
        return MAX_BLOCK_BATCH          # many large tiles
    bb = -(-B // 2)                     # otherwise: 2 tiles -> both v7x TensorCores busy
    if bb % 2:
        bb += 1                         # rows-per-step = 20*bb must be a multiple of 8
    return min(bb, B)


def _pick_chunks(rows_per_step):
    """Split a block's rows into <= CHUNK_ROWS_TARGET chunks (multiple of 8) if possible."""
    if rows_per_step <= CHUNK_ROWS_TARGET:
        return 1, rows_per_step
    for n in range(rows_per_step // CHUNK_ROWS_TARGET, 0, -1):
        if rows_per_step % n == 0 and (rows_per_step // n) % 8 == 0:
            return n, rows_per_step // n
    return 1, rows_per_step


# ------------------------- parameter construction -------------------------

def _xavier(key, fan_in, fan_out):
    bound = float(np.sqrt(6.0 / (fan_in + fan_out)))
    return jax.random.uniform(key, (fan_in, fan_out), jnp.float32, -bound, bound)


def build_params(key):
    k1, k2 = jax.random.split(key)
    return {
        "w1": _xavier(k1, IN_FEAT_DIM, HIDDEN_DIM),   # (30, 128)  == W.T of nn.Linear
        "b1": jnp.zeros((HIDDEN_DIM,), jnp.float32),
        "w2": _xavier(k2, HIDDEN_DIM, NN_LATENTS),    # (128, 256)
        "b2": jnp.zeros((NN_LATENTS,), jnp.float32),
    }


# ------------------------------ wrapper ------------------------------

@jax.jit
def input_process_v2(in_feats, params):
    """in_feats: (B, NN_HISTORY*30) f32 -> (B, NN_HISTORY, 256) bf16 (PyTorch forward)."""
    B = in_feats.shape[0]
    total_rows = B * NN_HISTORY

    block_batch = _pick_block_batch(B)
    rows_per_step = block_batch * NN_HISTORY
    num_tiles = pl.cdiv(total_rows, rows_per_step)
    n_chunks, chunk_rows = _pick_chunks(rows_per_step)

    # Row-major view: (B, 20*30) -> (B*20, 30); free reshape, f32 straight into the kernel.
    x2d = in_feats.reshape(total_rows, IN_FEAT_DIM)

    w1 = params["w1"].astype(jnp.bfloat16)
    b1 = params["b1"].reshape(1, HIDDEN_DIM).astype(jnp.float32)
    w2 = params["w2"].astype(jnp.bfloat16)
    b2 = params["b2"].reshape(1, NN_LATENTS).astype(jnp.float32)

    flops = 2 * total_rows * (IN_FEAT_DIM * HIDDEN_DIM + HIDDEN_DIM * NN_LATENTS)
    bytes_accessed = (x2d.size * 4                           # f32 input read
                      + (w1.size + w2.size) * 2              # bf16 weights (fetched once)
                      + (b1.size + b2.size) * 4              # f32 biases
                      + total_rows * NN_LATENTS * 2)         # bf16 output write

    kernel = functools.partial(input_process_kernel,
                               n_chunks=n_chunks, chunk_rows=chunk_rows)

    out2d = pl.pallas_call(
        kernel,
        out_shape=jax.ShapeDtypeStruct((total_rows, NN_LATENTS), jnp.bfloat16),
        grid=(num_tiles,),
        in_specs=[
            pl.BlockSpec((rows_per_step, IN_FEAT_DIM), lambda i: (i, 0)),
            pl.BlockSpec((IN_FEAT_DIM, HIDDEN_DIM), lambda i: (0, 0)),
            pl.BlockSpec((1, HIDDEN_DIM), lambda i: (0, 0)),
            pl.BlockSpec((HIDDEN_DIM, NN_LATENTS), lambda i: (0, 0)),
            pl.BlockSpec((1, NN_LATENTS), lambda i: (0, 0)),
        ],
        out_specs=pl.BlockSpec((rows_per_step, NN_LATENTS), lambda i: (i, 0)),
        compiler_params=pltpu.CompilerParams(
            dimension_semantics=("parallel",),
            vmem_limit_bytes=48 * 1024 * 1024),
        cost_estimate=pl.CostEstimate(
            flops=int(flops), transcendentals=0, bytes_accessed=int(bytes_accessed)),
    )(x2d, w1, b1, w2, b2)

    # bf16 activations returned; cast downstream only if f32 precision is required.
    return out2d.reshape(B, NN_HISTORY, NN_LATENTS)


# ------------------------------ reference ------------------------------

def reference(in_feats, params):
    B = in_feats.shape[0]
    x = in_feats.reshape(B, NN_HISTORY, IN_FEAT_DIM).astype(jnp.float32)
    h = jnp.maximum(x @ params["w1"] + params["b1"], 0.0)
    return h @ params["w2"] + params["b2"]


if __name__ == "__main__":
    key = jax.random.PRNGKey(0)
    k_params, k_x = jax.random.split(key)
    params = build_params(k_params)

    # B=50 -> block_batch=26 -> grid=(2,): exercises the multi-tile (megacore-parallel) path
    # AND the ragged last block (24 valid of 26), i.e. Pallas' masked boundary store.
    B = 50
    in_feats = jax.random.normal(k_x, (B, NN_HISTORY * IN_FEAT_DIM), jnp.float32)  # (50, 600)

    out = jax.block_until_ready(input_process_v2(in_feats, params))
    assert out.shape == (B, NN_HISTORY, NN_LATENTS), out.shape

    ref = jax.block_until_ready(reference(in_feats, params))
    max_err = float(jnp.max(jnp.abs(out.astype(jnp.float32) - ref)))
    assert max_err < 1e-1, f"kernel/reference mismatch, max abs err = {max_err}"

    print("KERNEL_OK")
</pallas_src>

<mosaic_0001>
module attributes {stable_mosaic.version = 11 : i64} {
  func.func @input_process_kernel(%arg0: i32, %arg1: memref<520x30xf32, #tpu.memory_space<vmem>>, %arg2: memref<30x128xbf16, #tpu.memory_space<vmem>>, %arg3: memref<1x128xf32, #tpu.memory_space<vmem>>, %arg4: memref<128x256xbf16, #tpu.memory_space<vmem>>, %arg5: memref<1x256xf32, #tpu.memory_space<vmem>>, %arg6: memref<520x256xbf16, #tpu.memory_space<vmem>>) attributes {dimension_semantics = [#tpu.dimension_semantics<parallel>], iteration_bounds = array<i64: 2>, scalar_prefetch = 0 : i64, scratch_operands = 0 : i64, tpu.core_type = #tpu.core_type<tc>, window_params = [{transform_indices = @transform_0, window_bounds = array<i64: 520, 30>}, {pipeline_mode = #tpu.pipeline_mode<synchronous>, transform_indices = @transform_1, window_bounds = array<i64: 30, 128>}, {pipeline_mode = #tpu.pipeline_mode<synchronous>, transform_indices = @transform_2, window_bounds = array<i64: 1, 128>}, {pipeline_mode = #tpu.pipeline_mode<synchronous>, transform_indices = @transform_3, window_bounds = array<i64: 128, 256>}, {pipeline_mode = #tpu.pipeline_mode<synchronous>, transform_indices = @transform_4, window_bounds = array<i64: 1, 256>}, {transform_indices = @transform_5, window_bounds = array<i64: 520, 256>}]} {
    %c0 = arith.constant 0 : index
    %c0_0 = arith.constant 0 : index
    %0 = vector.load %arg2[%c0, %c0_0] : memref<30x128xbf16, #tpu.memory_space<vmem>>, vector<30x128xbf16>
    %c0_1 = arith.constant 0 : index
    %c0_2 = arith.constant 0 : index
    %1 = vector.load %arg3[%c0_1, %c0_2] : memref<1x128xf32, #tpu.memory_space<vmem>>, vector<1x128xf32>
    %c0_3 = arith.constant 0 : index
    %c0_4 = arith.constant 0 : index
    %2 = vector.load %arg4[%c0_3, %c0_4] : memref<128x256xbf16, #tpu.memory_space<vmem>>, vector<128x256xbf16>
    %c0_5 = arith.constant 0 : index
    %c0_6 = arith.constant 0 : index
    %3 = vector.load %arg5[%c0_5, %c0_6] : memref<1x256xf32, #tpu.memory_space<vmem>>, vector<1x256xf32>
    %c0_7 = arith.constant 0 : index
    %c0_8 = arith.constant 0 : index
    %4 = vector.load %arg1[%c0_7, %c0_8] : memref<520x30xf32, #tpu.memory_space<vmem>>, vector<520x30xf32>
    %5 = arith.truncf %4 : vector<520x30xf32> to vector<520x30xbf16>
    %cst = arith.constant dense<0.000000e+00> : vector<520x128xf32>
    %6 = tpu.matmul %5, %0, %cst {dimension_numbers = #tpu.dot_dimension_numbers<[1], [0], [0], [1], [0, 0, 1, 1], [], []>} : vector<520x30xbf16>, vector<30x128xbf16>, vector<520x128xf32> -> vector<520x128xf32>
    %7 = vector.broadcast %1 : vector<1x128xf32> to vector<520x128xf32>
    %8 = arith.addf %6, %7 : vector<520x128xf32>
    %cst_9 = arith.constant 0.000000e+00 : f32
    %9 = vector.broadcast %cst_9 : f32 to vector<520x128xf32>
    %10 = arith.maximumf %8, %9 : vector<520x128xf32>
    %11 = arith.truncf %10 : vector<520x128xf32> to vector<520x128xbf16>
    %cst_10 = arith.constant dense<0.000000e+00> : vector<520x256xf32>
    %12 = tpu.matmul %11, %2, %cst_10 {dimension_numbers = #tpu.dot_dimension_numbers<[1], [0], [0], [1], [0, 0, 1, 1], [], []>} : vector<520x128xbf16>, vector<128x256xbf16>, vector<520x256xf32> -> vector<520x256xf32>
    %13 = vector.broadcast %3 : vector<1x256xf32> to vector<520x256xf32>
    %14 = arith.addf %12, %13 : vector<520x256xf32>
    %15 = arith.truncf %14 : vector<520x256xf32> to vector<520x256xbf16>
    %c0_11 = arith.constant 0 : index
    %c0_12 = arith.constant 0 : index
    %16 = vector.load %arg6[%c0_11, %c0_12] : memref<520x256xbf16, #tpu.memory_space<vmem>>, vector<520x256xbf16>
    tpu.vector_store %arg6[%c0_11, %c0_12], %15 {strides = array<i32>} : memref<520x256xbf16, #tpu.memory_space<vmem>>, vector<520x256xbf16>,
    return
  }
  func.func @transform_0(%arg0: i32) -> (i32, i32) {
    %c0_i32 = arith.constant 0 : i32
    %c0_i32_0 = arith.constant 0 : i32
    return %arg0, %c0_i32 : i32, i32
  }
  func.func @transform_1(%arg0: i32) -> (i32, i32) {
    %c0_i32 = arith.constant 0 : i32
    %c0_i32_0 = arith.constant 0 : i32
    %c0_i32_1 = arith.constant 0 : i32
    return %c0_i32, %c0_i32_0 : i32, i32
  }
  func.func @transform_2(%arg0: i32) -> (i32, i32) {
    %c0_i32 = arith.constant 0 : i32
    %c0_i32_0 = arith.constant 0 : i32
    %c0_i32_1 = arith.constant 0 : i32
    return %c0_i32, %c0_i32_0 : i32, i32
  }
  func.func @transform_3(%arg0: i32) -> (i32, i32) {
    %c0_i32 = arith.constant 0 : i32
    %c0_i32_0 = arith.constant 0 : i32
    %c0_i32_1 = arith.constant 0 : i32
    return %c0_i32, %c0_i32_0 : i32, i32
  }
  func.func @transform_4(%arg0: i32) -> (i32, i32) {
    %c0_i32 = arith.constant 0 : i32
    %c0_i32_0 = arith.constant 0 : i32
    %c0_i32_1 = arith.constant 0 : i32
    return %c0_i32, %c0_i32_0 : i32, i32
  }
  func.func @transform_5(%arg0: i32) -> (i32, i32) {
    %c0_i32 = arith.constant 0 : i32
    %c0_i32_0 = arith.constant 0 : i32
    return %arg0, %c0_i32 : i32, i32
  }
}

</mosaic_0001>

<bundles_post_ra>
// kernel: input_process_v2.1
= control target key start
LH: loop header
LB: loop body
LE: loop exit
PB: predicated region body
PF: predicated region fallthrough
CT: control target
= control target key end

     0   :  { %s2897_s18 = smov 0   ;;  %s2899_s19 = smov 0   ;;  %s3673_s0 = inlined_call_operand.vmem [shape: f32[1000,30], index: 0, kind: input, shape index: {}]   ;;  %s3674_s1 = inlined_call_operand.vmem [shape: bf16[30,128], index: 1, kind: input, shape index: {}]   ;;  %s3675_s2 = inlined_call_operand.vmem [shape: f32[1,128], index: 2, kind: input, shape index: {}]   ;;  %s3676_s3 = inlined_call_operand.vmem [shape: bf16[128,256], index: 3, kind: input, shape index: {}]   ;;  %s3677_s4 = inlined_call_operand.vmem [shape: f32[1,256], index: 4, kind: input, shape index: {}]   ;;  %s3678_s5 = inlined_call_operand.vmem [shape: bf16[1000,256], index: 5, kind: output, shape index: {}]  }
   0x1   :  { %s2901_s20 = smov 0  }
   0x2 LB: > { %s2910_s21 = sadd.s32 4294967295, %s2830_s20   ;;  %s2912_s22 = sadd.s32 1, %s2830_s20   ;;  %s2830_s20 = sphi %s2901_s20, %s3687_s20   ;;  %s2826_s19 = sphi %s2899_s19, %s3686_s19   ;;  %s2822_s18 = sphi %s2897_s18, %s3685_s18  }
   0x3   : > { %s129_s23 = ssub.s32 %s2830_s20, %s2912_s22  ;;  %s132_s24 = sadd.s32 1, %s2826_s19 }
   0x4   : > { %p130_p0 = scmp.eq.s32.totalorder %s129_s23, 0  ;;  %p142_p1 = scmp.ne.s32.totalorder %s2826_s19, %s2822_s18 }
   0x5   : > { %p143_p2 = scmp.eq.s32.totalorder %s2910_s21, 1  ;;  %p2264_p3 = scmp.ge.s32.totalorder %s2830_s20, 1 }
   0x6   : > { %s2920_s25 = scalar_select %p130_p0, %s2826_s19, %s132_s24  }
   0x7   : > { %p2922_p4 = por %p143_p2, %p142_p1  ;;  %p196_p5 = scmp.lt.s32.totalorder %s2830_s20, 3 }
   0x9   : > { %p197_p6 = pnand %p2264_p3, %p196_p5 }
   0xa   : > { %v2750_v0 = vld [vmem:[%s3674_s1] sm:$0xff] (!%p197_p6)   ;;  %v2864_v1 = vmov (!%p197_p6), 0.0   ;;  %v2751_v2 = vld [vmem:[%s3674_s1 + $0x8] sm:$0x7f] (!%p197_p6)   ;;  %vm485_vm0 = vcmask (!%p197_p6), 1046528   ;;  %s2934_s6 = smul.u32 (!%p197_p6), 65, %s2910_s21 }
   0xb   : > { %200 = sbr.rel (%p197_p6) target bundleno = 791 (0x317), region = 40  ;;  %2506 = vmatprep.subr.bf16.mxu0 (!%p197_p6), %v2864_v1  ;;  %v487_v3 = vsel (!%p197_p6), %vm485_vm0, %v2751_v2, 0  ;;  %vm2865_vm1 = vmmov (!%p197_p6), 0   ;;  %vm385_vm2 = vcmask (!%p197_p6), 244736   ;;  %v2752_v31 = vld [vmem:[%s3676_s3 + $0x4] ss:$8 sps:$4 sm:$0xff] (!%p197_p6)  }
   0xc   : > { %2507 = vmatpush3.bf16.msra.mxu0 (!%p197_p6), %v2750_v0  ;;  %2510 = vmatprep.mubr.msk.bf16.mxu0 (!%p197_p6), %vm2865_vm1, %v2864_v1  ;;  %p232_p7 = scmp.lt.s32.totalorder (!%p197_p6), %s2934_s6, 124  ;;  %v2754_v32 = vld [vmem:[%s3676_s3] ss:$8 sps:$4 sm:$0xff] (!%p197_p6)   ;;  %v2755_v36 = vld [vmem:[%s3676_s3 + $0x14] ss:$8 sps:$4 sm:$0xff] (!%p197_p6)   ;;  %v2866_v61 = vmov (!%p197_p6), 0  }
   0xd   : > { %2508 = vmatprep.subr.bf16.mxu0 (!%p197_p6), %v2864_v1  ;;  %2642 = vmatprep.subr.bf16.mxu1 (!%p197_p6), %v2752_v31  ;;  %v2757_v37 = vld [vmem:[%s3676_s3 + $0x10] ss:$8 sps:$4 sm:$0xff] (!%p197_p6)   ;;  %v2758_v38 = vld [vmem:[%s3676_s3 + $0x24] ss:$8 sps:$4 sm:$0xff] (!%p197_p6)   ;;  %v2760_v41 = vld [vmem:[%s3676_s3 + $0x20] ss:$8 sps:$4 sm:$0xff] (!%p197_p6)  }
   0xe   : > { %2650 = vmatpush1.bf16.msra.mxu1 (!%p197_p6), %v2754_v32  ;;  %v2761_v43 = vld [vmem:[%s3676_s3 + $0x34] ss:$8 sps:$4 sm:$0xff] (!%p197_p6)   ;;  %v2763_v44 = vld [vmem:[%s3676_s3 + $0x30] ss:$8 sps:$4 sm:$0xff] (!%p197_p6)   ;;  %v2764_v47 = vld [vmem:[%s3676_s3 + $0x44] ss:$8 sps:$4 sm:$0xff] (!%p197_p6)   ;;  %1016 = vmatprep.mubr.bf16.mxu1 (!%p197_p6), %v2866_v61 }
   0xf   : > { %2643 = vmatprep.subr.bf16.mxu1 (!%p197_p6), %v2755_v36  ;;  %v2766_v48 = vld [vmem:[%s3676_s3 + $0x40] ss:$8 sps:$4 sm:$0xff] (!%p197_p6)   ;;  %v2767_v50 = vld [vmem:[%s3676_s3 + $0x54] ss:$8 sps:$4 sm:$0xff] (!%p197_p6)   ;;  %v2769_v51 = vld [vmem:[%s3676_s3 + $0x50] ss:$8 sps:$4 sm:$0xff] (!%p197_p6)  }
  0x10   : > { %2509 = vmatpush3.bf16.msra.mxu0 (!%p197_p6), %v487_v3  ;;  %v2770_v54 = vld [vmem:[%s3676_s3 + $0x64] ss:$8 sps:$4 sm:$0xff] (!%p197_p6)   ;;  %v2772_v55 = vld [vmem:[%s3676_s3 + $0x60] ss:$8 sps:$4 sm:$0xff] (!%p197_p6)   ;;  %v2773_v57 = vld [vmem:[%s3676_s3 + $0x74] ss:$8 sps:$4 sm:$0xff] (!%p197_p6)  }
  0x11   : > { %974 = vmatprep.subr.bf16.mxu0 (!%p197_p6), %v2752_v31  ;;  %v2775_v58 = vld [vmem:[%s3676_s3 + $0x70] ss:$8 sps:$4 sm:$0xff] (!%p197_p6)   ;;  %s224_s13 = sand.u32 (!%p197_p6), 1, %s2822_s18  }
  0x12   : > { %s233_s7 = scalar_select %p232_p7, %s2934_s6, 124  ;;  %2651 = vmatpush1.bf16.msra.mxu1 %v2757_v37 }
  0x13   : > { %2644 = vmatprep.subr.bf16.mxu1 %v2758_v38  ;;  %s2658_s14 = smul.u32 520, %s224_s13  ;;  %s1800_s15 = ssub.s32 (%p2922_p4), 125, %s2934_s6 }
  0x14   : > { %s2265_s8 = sshll.u32 %s233_s7, 3  ;;  %s2470_s16 = smul.u32 (%p2922_p4), 520, %s2910_s21 }
  0x15   : > { %s2944_s11 = scalar_lea.vmem %s3673_s0, %s2265_s8  ;;  %s3264_s18 = scalar_lea.vmem [#allocation2], %s2658_s14  }
  0x16   : > { %v270_v4 = vld [vmem:[%s2944_s11] sm:$0xff]  ;;  %v271_v5 = vld [vmem:[%s2944_s11 + $0x8] sm:$0xff]  ;;  %v272_v7 = vld [vmem:[%s2944_s11 + $0x10] sm:$0xff]  ;;  %2652 = vmatpush1.bf16.msra.mxu1 %v2760_v41  ;;  %p1801_p8 = scmp.lt.s32.totalorder (%p2922_p4), %s1800_s15, 65  ;;  %s3474_s23 = scalar_lea.vmem (%p2922_p4), %s3678_s5, %s2470_s16  }
  0x17   : > { %v335_v6 = vpack.c.bf16 %v271_v5, %v270_v4  ;;  %v273_v8 = vld [vmem:[%s2944_s11 + $0x18] sm:$0xff]  ;;  %v274_v10 = vld [vmem:[%s2944_s11 + $0x20] sm:$0xff]  ;;  %v275_v11 = vld [vmem:[%s2944_s11 + $0x28] sm:$0xff]  ;;  %2645 = vmatprep.subr.bf16.mxu1 %v2761_v43 }
  0x18   : > { %v336_v9 = vpack.c.bf16 %v273_v8, %v272_v7  ;;  %v337_v12 = vpack.c.bf16 %v275_v11, %v274_v10  ;;  %v276_v13 = vld [vmem:[%s2944_s11 + $0x30] sm:$0xff]  ;;  %v277_v14 = vld [vmem:[%s2944_s11 + $0x38] sm:$0xff]  ;;  %v278_v16 = vld [vmem:[%s2944_s11 + $0x40] sm:$0xff] }
  0x19   : > { %2511 = vmatmul.mubr.msk.bf16.vlgmr.msra.gmra.mrb[0].mxu0 %vm385_vm2, %v335_v6  ;;  %v338_v15 = vpack.c.bf16 %v277_v14, %v276_v13  ;;  %v279_v17 = vld [vmem:[%s2944_s11 + $0x48] sm:$0xff]  ;;  %v280_v19 = vld [vmem:[%s2944_s11 + $0x50] sm:$0xff]  ;;  %v281_v20 = vld [vmem:[%s2944_s11 + $0x58] sm:$0xff] }
  0x1a   : > { %2514 = vmatprep.mubr.msk.bf16.mxu0 %vm2865_vm1, %v2864_v1  ;;  %v339_v18 = vpack.c.bf16 %v279_v17, %v278_v16  ;;  %v340_v21 = vpack.c.bf16 %v281_v20, %v280_v19  ;;  %v282_v22 = vld [vmem:[%s2944_s11 + $0x60] sm:$0xff]  ;;  %v283_v23 = vld [vmem:[%s2944_s11 + $0x68] sm:$0xff]  ;;  %v284_v25 = vld [vmem:[%s2944_s11 + $0x70] sm:$0xff]  ;;  %975 = vmatpush1.bf16.msra.mxu0 %v2754_v32 }
  0x1b   : > { %v341_v24 = vpack.c.bf16 %v283_v23, %v282_v22  ;;  %v285_v26 = vld [vmem:[%s2944_s11 + $0x78] sm:$0xff]  ;;  %v286_v28 = vld [vmem:[%s2944_s11 + $0x80] sm:$0xff]  ;;  %v287_v29 = vld [vmem:[%s2944_s11 + $0x88] sm:$0xff]  ;;  %976 = vmatprep.subr.bf16.mxu0 %v2755_v36  ;;  %2653 = vmatpush1.bf16.msra.mxu1 %v2763_v44 }
  0x1c   : > { %v342_v27 = vpack.c.bf16 %v285_v26, %v284_v25  ;;  %v343_v30 = vpack.c.bf16 %v287_v29, %v286_v28  ;;  %v288_v33 = vld [vmem:[%s2944_s11 + $0x90] sm:$0xff]  ;;  %v289_v34 = vld [vmem:[%s2944_s11 + $0x98] sm:$0xff]  ;;  %v290_v39 = vld [vmem:[%s2944_s11 + $0xa0] sm:$0xff]  ;;  %2646 = vmatprep.subr.bf16.mxu1 %v2764_v47 }
  0x1d   : > { %v344_v35 = vpack.c.bf16 %v289_v34, %v288_v33  ;;  %v291_v40 = vld [vmem:[%s2944_s11 + $0xa8] sm:$0xff]  ;;  %v292_v45 = vld [vmem:[%s2944_s11 + $0xb0] sm:$0xff]  ;;  %v293_v46 = vld [vmem:[%s2944_s11 + $0xb8] sm:$0xff] }
  0x1e   : > { %977 = vmatpush1.bf16.msra.mxu0 %v2757_v37  ;;  %v345_v42 = vpack.c.bf16 %v291_v40, %v290_v39  ;;  %v346_v49 = vpack.c.bf16 %v293_v46, %v292_v45  ;;  %v294_v52 = vld [vmem:[%s2944_s11 + $0xc0] sm:$0xff]  ;;  %v295_v53 = vld [vmem:[%s2944_s11 + $0xc8] sm:$0xff]  ;;  %v296_v59 = vld [vmem:[%s2944_s11 + $0xd0] sm:$0xff] }
  0x1f   : > { %978 = vmatprep.subr.bf16.mxu0 %v2758_v38  ;;  %2654 = vmatpush1.bf16.msra.mxu1 %v2766_v48  ;;  %v347_v56 = vpack.c.bf16 %v295_v53, %v294_v52  ;;  %v297_v60 = vld [vmem:[%s2944_s11 + $0xd8] sm:$0xff]  ;;  %v298_v63 = vld [vmem:[%s2944_s11 + $0xe0] sm:$0xff]  ;;  %v299_v0 = vld [vmem:[%s2944_s11 + $0xe8] sm:$0xff] }
  0x20   : > { %2647 = vmatprep.subr.bf16.mxu1 %v2767_v50  ;;  %v348_v62 = vpack.c.bf16 %v297_v60, %v296_v59  ;;  %v349_v2 = vpack.c.bf16 %v299_v0, %v298_v63  ;;  %v300_v3 = vld [vmem:[%s2944_s11 + $0xf0] sm:$0xff]  ;;  %v301_v4 = vld [vmem:[%s2944_s11 + $0xf8] sm:$0xff]  ;;  %v302_v6 = vld [vmem:[%s2944_s11 + $0x100] sm:$0xff] }
  0x21   : > { %2515 = vmatmul.mubr.msk.bf16.gmra.mrb[4].mxu0 %vm385_vm2, %v336_v9  ;;  %v350_v5 = vpack.c.bf16 %v301_v4, %v300_v3  ;;  %v303_v7 = vld [vmem:[%s2944_s11 + $0x108] sm:$0xff]  ;;  %v304_v9 = vld [vmem:[%s2944_s11 + $0x110] sm:$0xff]  ;;  %v305_v10 = vld [vmem:[%s2944_s11 + $0x118] sm:$0xff] }
  0x22   : > { %2518 = vmatprep.mubr.msk.bf16.mxu0 %vm2865_vm1, %v2864_v1  ;;  %979 = vmatpush1.bf16.msra.mxu0 %v2760_v41  ;;  %v351_v8 = vpack.c.bf16 %v303_v7, %v302_v6  ;;  %v352_v11 = vpack.c.bf16 %v305_v10, %v304_v9  ;;  %v307_v13 = vld [vmem:[%s2944_s11 + $0x128] sm:$0xff]  ;;  %v309_v16 = vld [vmem:[%s2944_s11 + $0x138] sm:$0xff]  ;;  %v320_v33 = vld [vmem:[%s2944_s11 + $0x190] sm:$0xff] }
  0x23   : > { %980 = vmatprep.subr.bf16.mxu0 %v2761_v43  ;;  %2655 = vmatpush1.bf16.msra.mxu1 %v2769_v51  ;;  %v311_v19 = vld [vmem:[%s2944_s11 + $0x148] sm:$0xff]  ;;  %v313_v22 = vld [vmem:[%s2944_s11 + $0x158] sm:$0xff]  ;;  %v322_v36 = vld [vmem:[%s2944_s11 + $0x1a0] sm:$0xff] }
  0x24   : > { %2648 = vmatprep.subr.bf16.mxu1 %v2770_v54  ;;  %v315_v25 = vld [vmem:[%s2944_s11 + $0x168] sm:$0xff]  ;;  %v317_v28 = vld [vmem:[%s2944_s11 + $0x178] sm:$0xff]  ;;  %v3131_v39 = vld [vmem:[%s3675_s2] ss:$0 sm:$0xff] }
  0x25   : > { %v319_v31 = vld [vmem:[%s2944_s11 + $0x188] sm:$0xff]  ;;  %v321_v34 = vld [vmem:[%s2944_s11 + $0x198] sm:$0xff]  ;;  %v324_v40 = vld [vmem:[%s2944_s11 + $0x1b0] sm:$0xff] }
  0x26   : > { %981 = vmatpush1.bf16.msra.mxu0 %v2763_v44  ;;  %v323_v37 = vld [vmem:[%s2944_s11 + $0x1a8] sm:$0xff]  ;;  %v325_v41 = vld [vmem:[%s2944_s11 + $0x1b8] sm:$0xff]  ;;  %v328_v0 = vld [vmem:[%s2944_s11 + $0x1d0] sm:$0xff] }
  0x27   : > { %982 = vmatprep.subr.bf16.mxu0 %v2764_v47  ;;  %2656 = vmatpush1.bf16.msra.mxu1 %v2772_v55  ;;  %v361_v38 = vpack.c.bf16 %v323_v37, %v322_v36  ;;  %v362_v45 = vpack.c.bf16 %v325_v41, %v324_v40  ;;  %v327_v52 = vld [vmem:[%s2944_s11 + $0x1c8] sm:$0xff]  ;;  %v334_v37 = vld [vmem:[%s2944_s11 + $0x200] sm:$0xff] }
  0x28   : > { %2649 = vmatprep.subr.bf16.mxu1 %v2773_v57 }
  0x29   : > { %2519 = vmatmul.mubr.msk.bf16.gmra.mrb[8].mxu0 %vm385_vm2, %v337_v12  ;;  %v306_v12 = vld [vmem:[%s2944_s11 + $0x120] sm:$0xff] }
  0x2a   : > { %2522 = vmatprep.mubr.msk.bf16.mxu0 %vm2865_vm1, %v2864_v1  ;;  %983 = vmatpush1.bf16.msra.mxu0 %v2766_v48  ;;  %v353_v14 = vpack.c.bf16 %v307_v13, %v306_v12  ;;  %v330_v13 = vld [vmem:[%s2944_s11 + $0x1e0] sm:$0xff] }
  0x2b   : > { %984 = vmatprep.subr.bf16.mxu0 %v2767_v50  ;;  %2657 = vmatpush1.bf16.msra.mxu1 %v2775_v58 }
  0x2e   : > { %985 = vmatpush1.bf16.msra.mxu0 %v2769_v51  ;;  %v326_v51 = vld [vmem:[%s2944_s11 + $0x1c0] sm:$0xff] }
  0x2f   : > { %986 = vmatprep.subr.bf16.mxu0 %v2770_v54 }
  0x31   : > { %2523 = vmatmul.mubr.msk.bf16.gmra.mrb[12].mxu0 %vm385_vm2, %v338_v15  ;;  %v308_v15 = vld [vmem:[%s2944_s11 + $0x130] sm:$0xff] }
  0x32   : > { %2526 = vmatprep.mubr.msk.bf16.mxu0 %vm2865_vm1, %v2864_v1  ;;  %987 = vmatpush1.bf16.msra.mxu0 %v2772_v55  ;;  %v354_v17 = vpack.c.bf16 %v309_v16, %v308_v15 }
  0x33   : > { %988 = vmatprep.subr.bf16.mxu0 %v2773_v57  ;;  %v363_v57 = vpack.c.bf16 %v327_v52, %v326_v51 }
  0x36   : > { %989 = vmatpush1.bf16.msra.mxu0 %v2775_v58 }
  0x39   : > { %2527 = vmatmul.mubr.msk.bf16.gmra.mrb[16].mxu0 %vm385_vm2, %v339_v18  ;;  %v310_v18 = vld [vmem:[%s2944_s11 + $0x140] sm:$0xff] }
  0x3a   : > { %2530 = vmatprep.mubr.msk.bf16.mxu0 %vm2865_vm1, %v2864_v1  ;;  %v355_v20 = vpack.c.bf16 %v311_v19, %v310_v18 }
  0x41   : > { %2531 = vmatmul.mubr.msk.bf16.gmra.mrb[20].mxu0 %vm385_vm2, %v340_v21  ;;  %v312_v21 = vld [vmem:[%s2944_s11 + $0x150] sm:$0xff] }
  0x42   : > { %2534 = vmatprep.mubr.msk.bf16.mxu0 %vm2865_vm1, %v2864_v1  ;;  %v356_v23 = vpack.c.bf16 %v313_v22, %v312_v21 }
  0x49   : > { %2535 = vmatmul.mubr.msk.bf16.gmra.mrb[24].mxu0 %vm385_vm2, %v341_v24  ;;  %v314_v24 = vld [vmem:[%s2944_s11 + $0x160] sm:$0xff] }
  0x4a   : > { %2538 = vmatprep.mubr.msk.bf16.mxu0 %vm2865_vm1, %v2864_v1  ;;  %v357_v26 = vpack.c.bf16 %v315_v25, %v314_v24  ;;  %v332_v25 = vld [vmem:[%s2944_s11 + $0x1f0] sm:$0xff] }
  0x51   : > { %2539 = vmatmul.mubr.msk.bf16.gmra.mrb[28].mxu0 %vm385_vm2, %v342_v27  ;;  %v316_v27 = vld [vmem:[%s2944_s11 + $0x170] sm:$0xff] }
  0x52   : > { %2542 = vmatprep.mubr.msk.bf16.mxu0 %vm2865_vm1, %v2864_v1  ;;  %v358_v29 = vpack.c.bf16 %v317_v28, %v316_v27 }
  0x59   : > { %2543 = vmatmul.mubr.msk.bf16.gmra.mrb[32].mxu0 %vm385_vm2, %v343_v30  ;;  %v318_v30 = vld [vmem:[%s2944_s11 + $0x180] sm:$0xff] }
  0x5a   : > { %2546 = vmatprep.mubr.msk.bf16.mxu0 %vm2865_vm1, %v2864_v1  ;;  %v359_v32 = vpack.c.bf16 %v319_v31, %v318_v30 }
  0x61   : > { %2547 = vmatmul.mubr.msk.bf16.gmra.mrb[36].mxu0 %vm385_vm2, %v344_v35  ;;  %v360_v35 = vpack.c.bf16 %v321_v34, %v320_v33 }
  0x62   : > { %2550 = vmatprep.mubr.msk.bf16.mxu0 %vm2865_vm1, %v2864_v1 }
  0x69   : > { %2551 = vmatmul.mubr.msk.bf16.gmra.mrb[40].mxu0 %vm385_vm2, %v345_v42 }
  0x6a   : > { %2554 = vmatprep.mubr.msk.bf16.mxu0 %vm2865_vm1, %v2864_v1 }
  0x71   : > { %2555 = vmatmul.mubr.msk.bf16.gmra.mrb[44].mxu0 %vm385_vm2, %v346_v49 }
  0x72   : > { %2558 = vmatprep.mubr.msk.bf16.mxu0 %vm2865_vm1, %v2864_v1 }
  0x79   : > { %2559 = vmatmul.mubr.msk.bf16.gmra.mrb[48].mxu0 %vm385_vm2, %v347_v56 }
  0x7a   : > { %2562 = vmatprep.mubr.msk.bf16.mxu0 %vm2865_vm1, %v2864_v1 }
  0x81   : > { %2563 = vmatmul.mubr.msk.bf16.gmra.mrb[52].mxu0 %vm385_vm2, %v348_v62 }
  0x82   : > { %2566 = vmatprep.mubr.msk.bf16.mxu0 %vm2865_vm1, %v2864_v1 }
  0x89   : > { %2567 = vmatmul.mubr.msk.bf16.gmra.mrb[56].mxu0 %vm385_vm2, %v349_v2  ;;  %v329_v2 = vld [vmem:[%s2944_s11 + $0x1d8] sm:$0xff] }
  0x8a   : > { %2570 = vmatprep.mubr.msk.bf16.mxu0 %vm2865_vm1, %v2864_v1  ;;  %v364_v7 = vpack.c.bf16 %v329_v2, %v328_v0 }
  0x91   : > { %2571 = vmatmul.mubr.msk.bf16.gmra.mrb[60].mxu0 %vm385_vm2, %v350_v5 }
  0x92   : > { %2574 = vmatprep.mubr.msk.bf16.mxu0 %vm2865_vm1, %v2864_v1 }
  0x99   : > { %2575 = vmatmul.mubr.msk.bf16.gmra.mrb[64].mxu0 %vm385_vm2, %v351_v8 }
  0x9a   : > { %2578 = vmatprep.mubr.msk.bf16.mxu0 %vm2865_vm1, %v2864_v1 }
  0xa1   : > { %2579 = vmatmul.mubr.msk.bf16.gmra.mrb[68].mxu0 %vm385_vm2, %v352_v11 }
  0xa2   : > { %2582 = vmatprep.mubr.msk.bf16.mxu0 %vm2865_vm1, %v2864_v1 }
  0xa9   : > { %2583 = vmatmul.mubr.msk.bf16.gmra.mrb[72].mxu0 %vm385_vm2, %v353_v14  ;;  %v331_v14 = vld [vmem:[%s2944_s11 + $0x1e8] sm:$0xff] }
  0xaa   : > { %2586 = vmatprep.mubr.msk.bf16.mxu0 %vm2865_vm1, %v2864_v1  ;;  %v365_v19 = vpack.c.bf16 %v331_v14, %v330_v13 }
  0xb1   : > { %2587 = vmatmul.mubr.msk.bf16.gmra.mrb[76].mxu0 %vm385_vm2, %v354_v17 }
  0xb2   : > { %2590 = vmatprep.mubr.msk.bf16.mxu0 %vm2865_vm1, %v2864_v1 }
  0xb9   : > { %2591 = vmatmul.mubr.msk.bf16.gmra.mrb[80].mxu0 %vm385_vm2, %v355_v20 }
  0xba   : > { %2594 = vmatprep.mubr.msk.bf16.mxu0 %vm2865_vm1, %v2864_v1 }
  0xc1   : > { %2595 = vmatmul.mubr.msk.bf16.gmra.mrb[84].mxu0 %vm385_vm2, %v356_v23 }
  0xc2   : > { %2598 = vmatprep.mubr.msk.bf16.mxu0 %vm2865_vm1, %v2864_v1 }
  0xc9   : > { %2599 = vmatmul.mubr.msk.bf16.gmra.mrb[88].mxu0 %vm385_vm2, %v357_v26  ;;  %v333_v26 = vld [vmem:[%s2944_s11 + $0x1f8] sm:$0xff] }
  0xca   : > { %2602 = vmatprep.mubr.msk.bf16.mxu0 %vm2865_vm1, %v2864_v1  ;;  %v366_v31 = vpack.c.bf16 %v333_v26, %v332_v25 }
  0xd1   : > { %2603 = vmatmul.mubr.msk.bf16.gmra.mrb[92].mxu0 %vm385_vm2, %v358_v29 }
  0xd2   : > { %2606 = vmatprep.mubr.msk.bf16.mxu0 %vm2865_vm1, %v2864_v1 }
  0xd9   : > { %2607 = vmatmul.mubr.msk.bf16.gmra.mrb[96].mxu0 %vm385_vm2, %v359_v32 }
  0xda   : > { %2610 = vmatprep.mubr.msk.bf16.mxu0 %vm2865_vm1, %v2864_v1 }
  0xe1   : > { %2611 = vmatmul.mubr.msk.bf16.gmra.mrb[100].mxu0 %vm385_vm2, %v360_v35 }
  0xe2   : > { %2614 = vmatprep.mubr.msk.bf16.mxu0 %vm2865_vm1, %v2864_v1 }
  0xe9   : > { %2615 = vmatmul.mubr.msk.bf16.gmra.mrb[104].mxu0 %vm385_vm2, %v361_v38 }
  0xea   : > { %2618 = vmatprep.mubr.msk.bf16.mxu0 %vm2865_vm1, %v2864_v1 }
  0xec   : > { %v523_v42 = vpop.f32.mrb[0].mxu0 }
  0xed   : > { %v524_v43 = vadd.f32 %v3131_v39, %v523_v42  ;;  %v2512_v44 = vpop.f32.mrb[1].mxu0 }
  0xee   : > { %v526_v46 = vpop.f32.mrb[2].mxu0 }
  0xef   : > { %v527_v47 = vadd.f32 %v3131_v39, %v526_v46  ;;  %v2513_v48 = vpop.f32.mrb[3].mxu0  ;;  %v785_v49 = vmax.f32 %v524_v43, 0.0  ;;  %v367_v43 = vpack.c.bf16 %v334_v37, %v334_v37 }
  0xf1   : > { %v786_v50 = vmax.f32 %v527_v47, 0.0  ;;  %2619 = vmatmul.mubr.msk.bf16.gmra.mrb[108].mxu0 %vm385_vm2, %v362_v45 }
  0xf2   : > { %2622 = vmatprep.mubr.msk.bf16.mxu0 %vm2865_vm1, %v2864_v1 }
  0xf3   : > { %v3144_v53 = vpack.c.bf16 %v786_v50, %v785_v49 }
  0xf4   : > { %v531_v54 = vpop.f32.mrb[4].mxu0 }
  0xf5   : > { %v532_v55 = vadd.f32 %v3131_v39, %v531_v54  ;;  %v2516_v56 = vpop.f32.mrb[5].mxu0 }
  0xf6   : > { %v534_v58 = vpop.f32.mrb[6].mxu0 }
  0xf7   : > { %v535_v59 = vadd.f32 %v3131_v39, %v534_v58  ;;  %v2517_v60 = vpop.f32.mrb[7].mxu0  ;;  %v787_v62 = vmax.f32 %v532_v55, 0.0 }
  0xf9   : > { %v788_v63 = vmax.f32 %v535_v59, 0.0  ;;  %2623 = vmatmul.mubr.msk.bf16.gmra.mrb[112].mxu0 %vm385_vm2, %v363_v57 }
  0xfa   : > { %2626 = vmatprep.mubr.msk.bf16.mxu0 %vm2865_vm1, %v2864_v1 }
  0xfb   : > { %v851_v3 = vpack.c.bf16 %v788_v63, %v787_v62 }
  0xfc   : > { %v539_v4 = vpop.f32.mrb[8].mxu0 }
  0xfd   : > { %v540_v5 = vadd.f32 %v3131_v39, %v539_v4  ;;  %v2520_v6 = vpop.f32.mrb[9].mxu0  ;;  %1017 = vmatmul.mubr.bf16.vlgmr.msra.gmra.mrb[0].mxu1 %v851_v3 }
  0xfe   : > { %v542_v8 = vpop.f32.mrb[10].mxu0  ;;  %1026 = vmatprep.mubr.bf16.mxu1 %v2866_v61 }
  0xff   : > { %v543_v9 = vadd.f32 %v3131_v39, %v542_v8  ;;  %v2521_v10 = vpop.f32.mrb[11].mxu0  ;;  %v789_v11 = vmax.f32 %v540_v5, 0.0 }
 0x101   : > { %v790_v12 = vmax.f32 %v543_v9, 0.0  ;;  %2627 = vmatmul.mubr.msk.bf16.gmra.mrb[116].mxu0 %vm385_vm2, %v364_v7 }
 0x102   : > { %2630 = vmatprep.mubr.msk.bf16.mxu0 %vm2865_vm1, %v2864_v1 }
 0x103   : > { %v852_v15 = vpack.c.bf16 %v790_v12, %v789_v11 }
 0x104   : > { %v547_v16 = vpop.f32.mrb[12].mxu0 }
 0x105   : > { %v548_v17 = vadd.f32 %v3131_v39, %v547_v16  ;;  %v2524_v18 = vpop.f32.mrb[13].mxu0  ;;  %1027 = vmatmul.mubr.bf16.gmra.mrb[4].mxu1 %v852_v15 }
 0x106   : > { %v550_v20 = vpop.f32.mrb[14].mxu0  ;;  %1036 = vmatprep.mubr.bf16.mxu1 %v2866_v61 }
 0x107   : > { %v551_v21 = vadd.f32 %v3131_v39, %v550_v20  ;;  %v2525_v22 = vpop.f32.mrb[15].mxu0  ;;  %v791_v23 = vmax.f32 %v548_v17, 0.0 }
 0x109   : > { %v792_v24 = vmax.f32 %v551_v21, 0.0  ;;  %2631 = vmatmul.mubr.msk.bf16.gmra.mrb[120].mxu0 %vm385_vm2, %v365_v19 }
 0x10a   : > { %2634 = vmatprep.mubr.msk.bf16.mxu0 %vm2865_vm1, %v2864_v1 }
 0x10b   : > { %v853_v27 = vpack.c.bf16 %v792_v24, %v791_v23 }
 0x10c   : > { %v555_v28 = vpop.f32.mrb[16].mxu0 }
 0x10d   : > { %v556_v29 = vadd.f32 %v3131_v39, %v555_v28  ;;  %v2528_v30 = vpop.f32.mrb[17].mxu0  ;;  %1037 = vmatmul.mubr.bf16.gmra.mrb[8].mxu1 %v853_v27 }
 0x10e   : > { %v558_v32 = vpop.f32.mrb[18].mxu0  ;;  %1046 = vmatprep.mubr.bf16.mxu1 %v2866_v61 }
 0x10f   : > { %v559_v33 = vadd.f32 %v3131_v39, %v558_v32  ;;  %v2529_v34 = vpop.f32.mrb[19].mxu0  ;;  %v793_v35 = vmax.f32 %v556_v29, 0.0 }
 0x111   : > { %v794_v36 = vmax.f32 %v559_v33, 0.0  ;;  %2635 = vmatmul.mubr.msk.bf16.gmra.mrb[124].mxu0 %vm385_vm2, %v366_v31 }
 0x112   : > { %2638 = vmatprep.mubr.msk.bf16.mxu0 %vm2865_vm1, %v2864_v1 }
 0x113   : > { %v854_v38 = vpack.c.bf16 %v794_v36, %v793_v35 }
 0x114   : > { %v563_v40 = vpop.f32.mrb[20].mxu0 }
 0x115   : > { %v564_v41 = vadd.f32 %v3131_v39, %v563_v40  ;;  %v2532_v42 = vpop.f32.mrb[21].mxu0  ;;  %1047 = vmatmul.mubr.bf16.gmra.mrb[12].mxu1 %v854_v38 }
 0x116   : > { %v566_v44 = vpop.f32.mrb[22].mxu0  ;;  %1056 = vmatprep.mubr.bf16.mxu1 %v2866_v61 }
 0x117   : > { %v567_v45 = vadd.f32 %v3131_v39, %v566_v44  ;;  %v2533_v46 = vpop.f32.mrb[23].mxu0  ;;  %v795_v47 = vmax.f32 %v564_v41, 0.0 }
 0x119   : > { %v796_v48 = vmax.f32 %v567_v45, 0.0  ;;  %2639 = vmatmul.mubr.msk.bf16.gmra.mrb[128].mxu0 %vm385_vm2, %v367_v43 }
 0x11a   : > { %1006 = vmatprep.mubr.bf16.mxu0 %v2866_v61 }
 0x11b   : > { %v855_v1 = vpack.c.bf16 %v796_v48, %v795_v47 }
 0x11c   : > { %v571_v49 = vpop.f32.mrb[24].mxu0 }
 0x11d   : > { %v572_v50 = vadd.f32 %v3131_v39, %v571_v49  ;;  %v2536_v51 = vpop.f32.mrb[25].mxu0  ;;  %1057 = vmatmul.mubr.bf16.gmra.mrb[16].mxu1 %v855_v1 }
 0x11e   : > { %v574_v52 = vpop.f32.mrb[26].mxu0  ;;  %1066 = vmatprep.mubr.bf16.mxu1 %v2866_v61 }
 0x11f   : > { %v575_v54 = vadd.f32 %v3131_v39, %v574_v52  ;;  %v2537_v55 = vpop.f32.mrb[27].mxu0  ;;  %v797_v56 = vmax.f32 %v572_v50, 0.0 }
 0x121   : > { %v798_v57 = vmax.f32 %v575_v54, 0.0  ;;  %1007 = vmatmul.mubr.bf16.vlgmr.msra.gmra.mrb[132].mxu0 %v3144_v53 }
 0x123   : > { %v856_v58 = vpack.c.bf16 %v798_v57, %v797_v56 }
 0x124   : > { %v579_v59 = vpop.f32.mrb[28].mxu0 }
 0x125   : > { %v580_v60 = vadd.f32 %v3131_v39, %v579_v59  ;;  %v2540_v62 = vpop.f32.mrb[29].mxu0  ;;  %1067 = vmatmul.mubr.bf16.gmra.mrb[20].mxu1 %v856_v58 }
 0x126   : > { %v582_v63 = vpop.f32.mrb[30].mxu0  ;;  %1076 = vmatprep.mubr.bf16.mxu1 %v2866_v61 }
 0x127   : > { %v583_v0 = vadd.f32 %v3131_v39, %v582_v63  ;;  %v2541_v2 = vpop.f32.mrb[31].mxu0  ;;  %v799_v3 = vmax.f32 %v580_v60, 0.0 }
 0x129   : > { %v800_v4 = vmax.f32 %v583_v0, 0.0 }
 0x12b   : > { %v857_v5 = vpack.c.bf16 %v800_v4, %v799_v3 }
 0x12c   : > { %v587_v6 = vpop.f32.mrb[32].mxu0 }
 0x12d   : > { %v588_v7 = vadd.f32 %v3131_v39, %v587_v6  ;;  %v2544_v8 = vpop.f32.mrb[33].mxu0  ;;  %1077 = vmatmul.mubr.bf16.gmra.mrb[24].mxu1 %v857_v5 }
 0x12e   : > { %v590_v53 = vpop.f32.mrb[34].mxu0  ;;  %1086 = vmatprep.mubr.bf16.mxu1 %v2866_v61 }
 0x12f   : > { %v591_v9 = vadd.f32 %v3131_v39, %v590_v53  ;;  %v2545_v10 = vpop.f32.mrb[35].mxu0  ;;  %v801_v11 = vmax.f32 %v588_v7, 0.0 }
 0x131   : > { %v802_v12 = vmax.f32 %v591_v9, 0.0 }
 0x133   : > { %v858_v13 = vpack.c.bf16 %v802_v12, %v801_v11 }
 0x134   : > { %v595_v14 = vpop.f32.mrb[36].mxu0 }
 0x135   : > { %v596_v15 = vadd.f32 %v3131_v39, %v595_v14  ;;  %v2548_v16 = vpop.f32.mrb[37].mxu0  ;;  %1087 = vmatmul.mubr.bf16.gmra.mrb[28].mxu1 %v858_v13 }
 0x136   : > { %v598_v17 = vpop.f32.mrb[38].mxu0  ;;  %1096 = vmatprep.mubr.bf16.mxu1 %v2866_v61 }
 0x137   : > { %v599_v18 = vadd.f32 %v3131_v39, %v598_v17  ;;  %v2549_v19 = vpop.f32.mrb[39].mxu0  ;;  %v803_v20 = vmax.f32 %v596_v15, 0.0 }
 0x139   : > { %v804_v21 = vmax.f32 %v599_v18, 0.0 }
 0x13b   : > { %v859_v22 = vpack.c.bf16 %v804_v21, %v803_v20 }
 0x13c   : > { %v603_v23 = vpop.f32.mrb[40].mxu0 }
 0x13d   : > { %v604_v24 = vadd.f32 %v3131_v39, %v603_v23  ;;  %v2552_v25 = vpop.f32.mrb[41].mxu0  ;;  %1097 = vmatmul.mubr.bf16.gmra.mrb[32].mxu1 %v859_v22 }
 0x13e   : > { %v606_v26 = vpop.f32.mrb[42].mxu0  ;;  %1106 = vmatprep.mubr.bf16.mxu1 %v2866_v61 }
 0x13f   : > { %v607_v27 = vadd.f32 %v3131_v39, %v606_v26  ;;  %v2553_v28 = vpop.f32.mrb[43].mxu0  ;;  %v805_v29 = vmax.f32 %v604_v24, 0.0 }
 0x141   : > { %v806_v30 = vmax.f32 %v607_v27, 0.0 }
 0x143   : > { %v860_v31 = vpack.c.bf16 %v806_v30, %v805_v29 }
 0x144   : > { %v611_v32 = vpop.f32.mrb[44].mxu0 }
 0x145   : > { %v612_v33 = vadd.f32 %v3131_v39, %v611_v32  ;;  %v2556_v34 = vpop.f32.mrb[45].mxu0  ;;  %1107 = vmatmul.mubr.bf16.gmra.mrb[36].mxu1 %v860_v31 }
 0x146   : > { %v614_v35 = vpop.f32.mrb[46].mxu0  ;;  %1116 = vmatprep.mubr.bf16.mxu1 %v2866_v61 }
 0x147   : > { %v615_v36 = vadd.f32 %v3131_v39, %v614_v35  ;;  %v2557_v37 = vpop.f32.mrb[47].mxu0  ;;  %v807_v38 = vmax.f32 %v612_v33, 0.0 }
 0x149   : > { %v808_v40 = vmax.f32 %v615_v36, 0.0 }
 0x14b   : > { %v861_v41 = vpack.c.bf16 %v808_v40, %v807_v38 }
 0x14c   : > { %v619_v42 = vpop.f32.mrb[48].mxu0 }
 0x14d   : > { %v620_v43 = vadd.f32 %v3131_v39, %v619_v42  ;;  %v2560_v44 = vpop.f32.mrb[49].mxu0  ;;  %1117 = vmatmul.mubr.bf16.gmra.mrb[40].mxu1 %v861_v41 }
 0x14e   : > { %v622_v45 = vpop.f32.mrb[50].mxu0  ;;  %1126 = vmatprep.mubr.bf16.mxu1 %v2866_v61 }
 0x14f   : > { %v623_v46 = vadd.f32 %v3131_v39, %v622_v45  ;;  %v2561_v47 = vpop.f32.mrb[51].mxu0  ;;  %v809_v48 = vmax.f32 %v620_v43, 0.0 }
 0x151   : > { %v810_v1 = vmax.f32 %v623_v46, 0.0 }
 0x153   : > { %v862_v49 = vpack.c.bf16 %v810_v1, %v809_v48 }
 0x154   : > { %v627_v50 = vpop.f32.mrb[52].mxu0 }
 0x155   : > { %v628_v51 = vadd.f32 %v3131_v39, %v627_v50  ;;  %v2564_v52 = vpop.f32.mrb[53].mxu0  ;;  %1127 = vmatmul.mubr.bf16.gmra.mrb[44].mxu1 %v862_v49 }
 0x156   : > { %v630_v54 = vpop.f32.mrb[54].mxu0  ;;  %1136 = vmatprep.mubr.bf16.mxu1 %v2866_v61 }
 0x157   : > { %v631_v55 = vadd.f32 %v3131_v39, %v630_v54  ;;  %v2565_v56 = vpop.f32.mrb[55].mxu0  ;;  %v811_v57 = vmax.f32 %v628_v51, 0.0 }
 0x159   : > { %v812_v58 = vmax.f32 %v631_v55, 0.0 }
 0x15b   : > { %v863_v59 = vpack.c.bf16 %v812_v58, %v811_v57 }
 0x15c   : > { %v635_v60 = vpop.f32.mrb[56].mxu0 }
 0x15d   : > { %v636_v62 = vadd.f32 %v3131_v39, %v635_v60  ;;  %v2568_v63 = vpop.f32.mrb[57].mxu0  ;;  %1137 = vmatmul.mubr.bf16.gmra.mrb[48].mxu1 %v863_v59 }
 0x15e   : > { %v638_v0 = vpop.f32.mrb[58].mxu0  ;;  %1146 = vmatprep.mubr.bf16.mxu1 %v2866_v61 }
 0x15f   : > { %v639_v2 = vadd.f32 %v3131_v39, %v638_v0  ;;  %v2569_v3 = vpop.f32.mrb[59].mxu0  ;;  %v813_v4 = vmax.f32 %v636_v62, 0.0 }
 0x161   : > { %v814_v5 = vmax.f32 %v639_v2, 0.0 }
 0x163   : > { %v864_v6 = vpack.c.bf16 %v814_v5, %v813_v4 }
 0x164   : > { %v643_v7 = vpop.f32.mrb[60].mxu0 }
 0x165   : > { %v644_v8 = vadd.f32 %v3131_v39, %v643_v7  ;;  %v2572_v53 = vpop.f32.mrb[61].mxu0  ;;  %1147 = vmatmul.mubr.bf16.gmra.mrb[52].mxu1 %v864_v6 }
 0x166   : > { %v646_v9 = vpop.f32.mrb[62].mxu0  ;;  %1156 = vmatprep.mubr.bf16.mxu1 %v2866_v61 }
 0x167   : > { %v647_v10 = vadd.f32 %v3131_v39, %v646_v9  ;;  %v2573_v11 = vpop.f32.mrb[63].mxu0  ;;  %v815_v12 = vmax.f32 %v644_v8, 0.0 }
 0x169   : > { %v816_v13 = vmax.f32 %v647_v10, 0.0 }
 0x16b   : > { %v865_v14 = vpack.c.bf16 %v816_v13, %v815_v12 }
 0x16c   : > { %v651_v15 = vpop.f32.mrb[64].mxu0 }
 0x16d   : > { %v652_v16 = vadd.f32 %v3131_v39, %v651_v15  ;;  %v2576_v17 = vpop.f32.mrb[65].mxu0  ;;  %1157 = vmatmul.mubr.bf16.gmra.mrb[56].mxu1 %v865_v14 }
 0x16e   : > { %v654_v18 = vpop.f32.mrb[66].mxu0  ;;  %1166 = vmatprep.mubr.bf16.mxu1 %v2866_v61 }
 0x16f   : > { %v655_v19 = vadd.f32 %v3131_v39, %v654_v18  ;;  %v2577_v20 = vpop.f32.mrb[67].mxu0  ;;  %v817_v21 = vmax.f32 %v652_v16, 0.0 }
 0x171   : > { %v818_v22 = vmax.f32 %v655_v19, 0.0 }
 0x173   : > { %v866_v23 = vpack.c.bf16 %v818_v22, %v817_v21 }
 0x174   : > { %v659_v24 = vpop.f32.mrb[68].mxu0 }
 0x175   : > { %v660_v25 = vadd.f32 %v3131_v39, %v659_v24  ;;  %v2580_v26 = vpop.f32.mrb[69].mxu0  ;;  %1167 = vmatmul.mubr.bf16.gmra.mrb[60].mxu1 %v866_v23 }
 0x176   : > { %v662_v27 = vpop.f32.mrb[70].mxu0  ;;  %1176 = vmatprep.mubr.bf16.mxu1 %v2866_v61 }
 0x177   : > { %v663_v28 = vadd.f32 %v3131_v39, %v662_v27  ;;  %v2581_v29 = vpop.f32.mrb[71].mxu0  ;;  %v819_v30 = vmax.f32 %v660_v25, 0.0 }
 0x179   : > { %v820_v31 = vmax.f32 %v663_v28, 0.0 }
 0x17b   : > { %v867_v32 = vpack.c.bf16 %v820_v31, %v819_v30 }
 0x17c   : > { %v667_v33 = vpop.f32.mrb[72].mxu0 }
 0x17d   : > { %v668_v34 = vadd.f32 %v3131_v39, %v667_v33  ;;  %v2584_v35 = vpop.f32.mrb[73].mxu0  ;;  %1177 = vmatmul.mubr.bf16.gmra.mrb[64].mxu1 %v867_v32 }
 0x17e   : > { %v670_v36 = vpop.f32.mrb[74].mxu0  ;;  %1186 = vmatprep.mubr.bf16.mxu1 %v2866_v61 }
 0x17f   : > { %v671_v37 = vadd.f32 %v3131_v39, %v670_v36  ;;  %v2585_v38 = vpop.f32.mrb[75].mxu0  ;;  %v821_v40 = vmax.f32 %v668_v34, 0.0 }
 0x181   : > { %v822_v41 = vmax.f32 %v671_v37, 0.0 }
 0x183   : > { %v868_v42 = vpack.c.bf16 %v822_v41, %v821_v40 }
 0x184   : > { %v675_v43 = vpop.f32.mrb[76].mxu0 }
 0x185   : > { %v676_v44 = vadd.f32 %v3131_v39, %v675_v43  ;;  %v2588_v45 = vpop.f32.mrb[77].mxu0  ;;  %1187 = vmatmul.mubr.bf16.gmra.mrb[68].mxu1 %v868_v42 }
 0x186   : > { %v678_v46 = vpop.f32.mrb[78].mxu0  ;;  %1196 = vmatprep.mubr.bf16.mxu1 %v2866_v61 }
 0x187   : > { %v679_v47 = vadd.f32 %v3131_v39, %v678_v46  ;;  %v2589_v48 = vpop.f32.mrb[79].mxu0  ;;  %v823_v1 = vmax.f32 %v676_v44, 0.0 }
 0x189   : > { %v824_v49 = vmax.f32 %v679_v47, 0.0 }
 0x18b   : > { %v869_v50 = vpack.c.bf16 %v824_v49, %v823_v1 }
 0x18c   : > { %v683_v51 = vpop.f32.mrb[80].mxu0 }
 0x18d   : > { %v684_v52 = vadd.f32 %v3131_v39, %v683_v51  ;;  %v2592_v54 = vpop.f32.mrb[81].mxu0  ;;  %1197 = vmatmul.mubr.bf16.gmra.mrb[72].mxu1 %v869_v50  ;;  %v884_v51 = vlaneseq }
 0x18e   : > { %v686_v55 = vpop.f32.mrb[82].mxu0  ;;  %1206 = vmatprep.mubr.bf16.mxu1 %v2866_v61 }
 0x18f   : > { %v687_v56 = vadd.f32 %v3131_v39, %v686_v55  ;;  %v2593_v57 = vpop.f32.mrb[83].mxu0  ;;  %v825_v58 = vmax.f32 %v684_v52, 0.0 }
 0x190   : > { %v885_v57 = vshrl.u32 %v884_v51, 7 }
 0x191   : > { %v826_v59 = vmax.f32 %v687_v56, 0.0 }
 0x193   : > { %v870_v60 = vpack.c.bf16 %v826_v59, %v825_v58 }
 0x194   : > { %v691_v62 = vpop.f32.mrb[84].mxu0 }
 0x195   : > { %v692_v63 = vadd.f32 %v3131_v39, %v691_v62  ;;  %v2596_v0 = vpop.f32.mrb[85].mxu0  ;;  %1207 = vmatmul.mubr.bf16.gmra.mrb[76].mxu1 %v870_v60 }
 0x196   : > { %v694_v2 = vpop.f32.mrb[86].mxu0  ;;  %1216 = vmatprep.mubr.bf16.mxu1 %v2866_v61  ;;  %v886_v0 = vsub.s32 0, %v885_v57 }
 0x197   : > { %v695_v3 = vadd.f32 %v3131_v39, %v694_v2  ;;  %v2597_v4 = vpop.f32.mrb[87].mxu0  ;;  %v827_v5 = vmax.f32 %v692_v63, 0.0  ;;  %v269_v2 = vld [vmem:[%s3677_s4] sm:$0x3] }
 0x199   : > { %v828_v6 = vmax.f32 %v695_v3, 0.0  ;;  %v890_v3 = vsub.s32 1, %v885_v57 }
 0x19b   : > { %v871_v7 = vpack.c.bf16 %v828_v6, %v827_v5 }
 0x19c   : > { %v699_v8 = vpop.f32.mrb[88].mxu0 }
 0x19d   : > { %v700_v53 = vadd.f32 %v3131_v39, %v699_v8  ;;  %v2600_v9 = vpop.f32.mrb[89].mxu0  ;;  %1217 = vmatmul.mubr.bf16.gmra.mrb[80].mxu1 %v871_v7  ;;  %v3253_v8 = vrot.slane %v269_v2, %v886_v0 }
 0x19e   : > { %v702_v10 = vpop.f32.mrb[90].mxu0  ;;  %1226 = vmatprep.mubr.bf16.mxu1 %v2866_v61  ;;  %v3255_v9 = vrot.slane %v269_v2, %v890_v3 }
 0x19f   : > { %v703_v11 = vadd.f32 %v3131_v39, %v702_v10  ;;  %v2601_v12 = vpop.f32.mrb[91].mxu0  ;;  %v829_v13 = vmax.f32 %v700_v53, 0.0 }
 0x1a1   : > { %v830_v14 = vmax.f32 %v703_v11, 0.0 }
 0x1a3   : > { %v872_v15 = vpack.c.bf16 %v830_v14, %v829_v13 }
 0x1a4   : > { %v707_v16 = vpop.f32.mrb[92].mxu0 }
 0x1a5   : > { %v708_v17 = vadd.f32 %v3131_v39, %v707_v16  ;;  %v2604_v18 = vpop.f32.mrb[93].mxu0  ;;  %1227 = vmatmul.mubr.bf16.gmra.mrb[84].mxu1 %v872_v15 }
 0x1a6   : > { %v710_v19 = vpop.f32.mrb[94].mxu0  ;;  %1236 = vmatprep.mubr.bf16.mxu1 %v2866_v61 }
 0x1a7   : > { %v711_v20 = vadd.f32 %v3131_v39, %v710_v19  ;;  %v2605_v21 = vpop.f32.mrb[95].mxu0  ;;  %v831_v22 = vmax.f32 %v708_v17, 0.0 }
 0x1a9   : > { %v832_v23 = vmax.f32 %v711_v20, 0.0 }
 0x1ab   : > { %v873_v24 = vpack.c.bf16 %v832_v23, %v831_v22 }
 0x1ac   : > { %v715_v25 = vpop.f32.mrb[96].mxu0 }
 0x1ad   : > { %v716_v26 = vadd.f32 %v3131_v39, %v715_v25  ;;  %v2608_v27 = vpop.f32.mrb[97].mxu0  ;;  %1237 = vmatmul.mubr.bf16.gmra.mrb[88].mxu1 %v873_v24 }
 0x1ae   : > { %v718_v28 = vpop.f32.mrb[98].mxu0  ;;  %1246 = vmatprep.mubr.bf16.mxu1 %v2866_v61 }
 0x1af   : > { %v719_v29 = vadd.f32 %v3131_v39, %v718_v28  ;;  %v2609_v30 = vpop.f32.mrb[99].mxu0  ;;  %v833_v31 = vmax.f32 %v716_v26, 0.0 }
 0x1b1   : > { %v834_v32 = vmax.f32 %v719_v29, 0.0 }
 0x1b3   : > { %v874_v33 = vpack.c.bf16 %v834_v32, %v833_v31 }
 0x1b4   : > { %v723_v34 = vpop.f32.mrb[100].mxu0 }
 0x1b5   : > { %v724_v35 = vadd.f32 %v3131_v39, %v723_v34  ;;  %v2612_v36 = vpop.f32.mrb[101].mxu0  ;;  %1247 = vmatmul.mubr.bf16.gmra.mrb[92].mxu1 %v874_v33 }
 0x1b6   : > { %v726_v37 = vpop.f32.mrb[102].mxu0  ;;  %1256 = vmatprep.mubr.bf16.mxu1 %v2866_v61 }
 0x1b7   : > { %v727_v38 = vadd.f32 %v3131_v39, %v726_v37  ;;  %v2613_v40 = vpop.f32.mrb[103].mxu0  ;;  %v835_v41 = vmax.f32 %v724_v35, 0.0 }
 0x1b9   : > { %v836_v42 = vmax.f32 %v727_v38, 0.0 }
 0x1bb   : > { %v875_v43 = vpack.c.bf16 %v836_v42, %v835_v41 }
 0x1bc   : > { %v731_v44 = vpop.f32.mrb[104].mxu0 }
 0x1bd   : > { %v732_v45 = vadd.f32 %v3131_v39, %v731_v44  ;;  %v2616_v46 = vpop.f32.mrb[105].mxu0  ;;  %1257 = vmatmul.mubr.bf16.gmra.mrb[96].mxu1 %v875_v43 }
 0x1be   : > { %v734_v47 = vpop.f32.mrb[106].mxu0  ;;  %1266 = vmatprep.mubr.bf16.mxu1 %v2866_v61 }
 0x1bf   : > { %v735_v48 = vadd.f32 %v3131_v39, %v734_v47  ;;  %v2617_v1 = vpop.f32.mrb[107].mxu0  ;;  %v837_v49 = vmax.f32 %v732_v45, 0.0 }
 0x1c1   : > { %v838_v50 = vmax.f32 %v735_v48, 0.0 }
 0x1c3   : > { %v876_v52 = vpack.c.bf16 %v838_v50, %v837_v49 }
 0x1c4   : > { %v739_v54 = vpop.f32.mrb[108].mxu0 }
 0x1c5   : > { %v740_v55 = vadd.f32 %v3131_v39, %v739_v54  ;;  %v2620_v56 = vpop.f32.mrb[109].mxu0  ;;  %1267 = vmatmul.mubr.bf16.gmra.mrb[100].mxu1 %v876_v52 }
 0x1c6   : > { %v742_v58 = vpop.f32.mrb[110].mxu0  ;;  %1276 = vmatprep.mubr.bf16.mxu1 %v2866_v61 }
 0x1c7   : > { %v743_v59 = vadd.f32 %v3131_v39, %v742_v58  ;;  %v2621_v60 = vpop.f32.mrb[111].mxu0  ;;  %v839_v62 = vmax.f32 %v740_v55, 0.0 }
 0x1c9   : > { %v840_v63 = vmax.f32 %v743_v59, 0.0 }
 0x1cb   : > { %v877_v4 = vpack.c.bf16 %v840_v63, %v839_v62 }
 0x1cc   : > { %v747_v5 = vpop.f32.mrb[112].mxu0 }
 0x1cd   : > { %v748_v6 = vadd.f32 %v3131_v39, %v747_v5  ;;  %v2624_v7 = vpop.f32.mrb[113].mxu0  ;;  %1277 = vmatmul.mubr.bf16.gmra.mrb[104].mxu1 %v877_v4 }
 0x1ce   : > { %v750_v53 = vpop.f32.mrb[114].mxu0  ;;  %1286 = vmatprep.mubr.bf16.mxu1 %v2866_v61 }
 0x1cf   : > { %v751_v10 = vadd.f32 %v3131_v39, %v750_v53  ;;  %v2625_v11 = vpop.f32.mrb[115].mxu0  ;;  %v841_v13 = vmax.f32 %v748_v6, 0.0 }
 0x1d0   : > { %v1018_v12 = vpop.f32.mrb[0].mxu1 }
 0x1d1   : > { %v842_v14 = vmax.f32 %v751_v10, 0.0  ;;  %v1019_v15 = vadd.f32 %v1018_v12, %v3253_v8  ;;  %v1020_v16 = vpop.f32.mrb[1].mxu1 }
 0x1d2   : > { %v1021_v17 = vadd.f32 %v1020_v16, %v3255_v9  ;;  %v1022_v18 = vpop.f32.mrb[2].mxu1 }
 0x1d3   : > { %v878_v19 = vpack.c.bf16 %v842_v14, %v841_v13  ;;  %v1023_v20 = vadd.f32 %v1022_v18, %v3253_v8  ;;  %v1024_v21 = vpop.f32.mrb[3].mxu1 }
 0x1d4   : > { %v2402_v22 = vpack.c.bf16 %v1021_v17, %v1019_v15  ;;  %v1025_v23 = vadd.f32 %v1024_v21, %v3255_v9  ;;  %v755_v24 = vpop.f32.mrb[116].mxu0 }
 0x1d5   : > { %v756_v25 = vadd.f32 %v3131_v39, %v755_v24  ;;  %v2628_v26 = vpop.f32.mrb[117].mxu0  ;;  %1287 = vmatmul.mubr.bf16.gmra.mrb[108].mxu1 %v878_v19 }
 0x1d6   : > { %1729 = vst [vmem:[%s3264_s18 + $0x10] sm:$0xff] %v2402_v22  ;;  %v2403_v27 = vpack.c.bf16 %v1025_v23, %v1023_v20  ;;  %v758_v28 = vpop.f32.mrb[118].mxu0  ;;  %1296 = vmatprep.mubr.bf16.mxu1 %v2866_v61 }
 0x1d7   : > { %v759_v29 = vadd.f32 %v3131_v39, %v758_v28  ;;  %v2629_v30 = vpop.f32.mrb[119].mxu0  ;;  %v843_v32 = vmax.f32 %v756_v25, 0.0 }
 0x1d8   : > { %1730 = vst [vmem:[%s3264_s18 + $0x18] sm:$0xff] %v2403_v27  ;;  %v1028_v31 = vpop.f32.mrb[4].mxu1 }
 0x1d9   : > { %v844_v33 = vmax.f32 %v759_v29, 0.0  ;;  %v1029_v34 = vadd.f32 %v1028_v31, %v3253_v8  ;;  %v1030_v35 = vpop.f32.mrb[5].mxu1 }
 0x1da   : > { %v1031_v36 = vadd.f32 %v1030_v35, %v3255_v9  ;;  %v1032_v37 = vpop.f32.mrb[6].mxu1 }
 0x1db   : > { %v879_v38 = vpack.c.bf16 %v844_v33, %v843_v32  ;;  %v1033_v40 = vadd.f32 %v1032_v37, %v3253_v8  ;;  %v1034_v41 = vpop.f32.mrb[7].mxu1 }
 0x1dc   : > { %v2404_v42 = vpack.c.bf16 %v1031_v36, %v1029_v34  ;;  %v1035_v43 = vadd.f32 %v1034_v41, %v3255_v9  ;;  %v763_v44 = vpop.f32.mrb[120].mxu0 }
 0x1dd   : > { %v764_v45 = vadd.f32 %v3131_v39, %v763_v44  ;;  %v2632_v46 = vpop.f32.mrb[121].mxu0  ;;  %1297 = vmatmul.mubr.bf16.gmra.mrb[112].mxu1 %v879_v38 }
 0x1de   : > { %1731 = vst [vmem:[%s3264_s18 + $0x20] sm:$0xff] %v2404_v42  ;;  %v2405_v47 = vpack.c.bf16 %v1035_v43, %v1033_v40  ;;  %v766_v48 = vpop.f32.mrb[122].mxu0  ;;  %1306 = vmatprep.mubr.bf16.mxu1 %v2866_v61 }
 0x1df   : > { %v767_v1 = vadd.f32 %v3131_v39, %v766_v48  ;;  %v2633_v49 = vpop.f32.mrb[123].mxu0  ;;  %v845_v51 = vmax.f32 %v764_v45, 0.0 }
 0x1e0   : > { %1732 = vst [vmem:[%s3264_s18 + $0x28] sm:$0xff] %v2405_v47  ;;  %v1038_v50 = vpop.f32.mrb[8].mxu1 }
 0x1e1   : > { %v846_v52 = vmax.f32 %v767_v1, 0.0  ;;  %v1039_v54 = vadd.f32 %v1038_v50, %v3253_v8  ;;  %v1040_v55 = vpop.f32.mrb[9].mxu1 }
 0x1e2   : > { %v1041_v56 = vadd.f32 %v1040_v55, %v3255_v9  ;;  %v1042_v57 = vpop.f32.mrb[10].mxu1 }
 0x1e3   : > { %v880_v58 = vpack.c.bf16 %v846_v52, %v845_v51  ;;  %v1043_v59 = vadd.f32 %v1042_v57, %v3253_v8  ;;  %v1044_v60 = vpop.f32.mrb[11].mxu1 }
 0x1e4   : > { %v2406_v62 = vpack.c.bf16 %v1041_v56, %v1039_v54  ;;  %v1045_v63 = vadd.f32 %v1044_v60, %v3255_v9  ;;  %v771_v0 = vpop.f32.mrb[124].mxu0 }
 0x1e5   : > { %v772_v2 = vadd.f32 %v3131_v39, %v771_v0  ;;  %v2636_v3 = vpop.f32.mrb[125].mxu0  ;;  %1307 = vmatmul.mubr.bf16.gmra.mrb[116].mxu1 %v880_v58 }
 0x1e6   : > { %1733 = vst [vmem:[%s3264_s18 + $0x30] sm:$0xff] %v2406_v62  ;;  %v2407_v4 = vpack.c.bf16 %v1045_v63, %v1043_v59  ;;  %v774_v5 = vpop.f32.mrb[126].mxu0  ;;  %1316 = vmatprep.mubr.bf16.mxu1 %v2866_v61 }
 0x1e7   : > { %v775_v6 = vadd.f32 %v3131_v39, %v774_v5  ;;  %v2637_v7 = vpop.f32.mrb[127].mxu0  ;;  %v847_v10 = vmax.f32 %v772_v2, 0.0 }
 0x1e8   : > { %1734 = vst [vmem:[%s3264_s18 + $0x38] sm:$0xff] %v2407_v4  ;;  %v1048_v53 = vpop.f32.mrb[12].mxu1 }
 0x1e9   : > { %v848_v11 = vmax.f32 %v775_v6, 0.0  ;;  %v1049_v12 = vadd.f32 %v1048_v53, %v3253_v8  ;;  %v1050_v13 = vpop.f32.mrb[13].mxu1 }
 0x1ea   : > { %v1051_v14 = vadd.f32 %v1050_v13, %v3255_v9  ;;  %v1052_v15 = vpop.f32.mrb[14].mxu1 }
 0x1eb   : > { %v881_v16 = vpack.c.bf16 %v848_v11, %v847_v10  ;;  %v1053_v17 = vadd.f32 %v1052_v15, %v3253_v8  ;;  %v1054_v18 = vpop.f32.mrb[15].mxu1 }
 0x1ec   : > { %v2408_v19 = vpack.c.bf16 %v1051_v14, %v1049_v12  ;;  %v1055_v20 = vadd.f32 %v1054_v18, %v3255_v9  ;;  %v779_v21 = vpop.f32.mrb[128].mxu0 }
 0x1ed   : > { %v780_v22 = vadd.f32 %v3131_v39, %v779_v21  ;;  %v2640_v23 = vpop.f32.mrb[129].mxu0  ;;  %1317 = vmatmul.mubr.bf16.gmra.mrb[120].mxu1 %v881_v16 }
 0x1ee   : > { %1735 = vst [vmem:[%s3264_s18 + $0x40] sm:$0xff] %v2408_v19  ;;  %v2409_v24 = vpack.c.bf16 %v1055_v20, %v1053_v17  ;;  %v782_v25 = vpop.f32.mrb[130].mxu0  ;;  %1326 = vmatprep.mubr.bf16.mxu1 %v2866_v61 }
 0x1ef   : > { %v849_v26 = vmax.f32 %v780_v22, 0.0  ;;  %v2641_v27 = vpop.f32.mrb[131].mxu0 }
 0x1f0   : > { %1736 = vst [vmem:[%s3264_s18 + $0x48] sm:$0xff] %v2409_v24  ;;  %v1058_v28 = vpop.f32.mrb[16].mxu1 }
 0x1f1   : > { %v882_v29 = vpack.c.bf16 %v849_v26, %v849_v26  ;;  %v1059_v30 = vadd.f32 %v1058_v28, %v3253_v8  ;;  %v1060_v31 = vpop.f32.mrb[17].mxu1 }
 0x1f2   : > { %v1061_v32 = vadd.f32 %v1060_v31, %v3255_v9  ;;  %v1062_v39 = vpop.f32.mrb[18].mxu1 }
 0x1f3   : > { %v1063_v33 = vadd.f32 %v1062_v39, %v3253_v8  ;;  %v1064_v34 = vpop.f32.mrb[19].mxu1 }
 0x1f4   : > { %v2410_v35 = vpack.c.bf16 %v1061_v32, %v1059_v30  ;;  %v1065_v36 = vadd.f32 %v1064_v34, %v3255_v9  ;;  %v1008_v61 = vpop.f32.mrb[132].mxu0 }
 0x1f5   : > { %v1009_v37 = vadd.f32 %v1008_v61, %v3253_v8  ;;  %v1010_v38 = vpop.f32.mrb[133].mxu0  ;;  %1327 = vmatmul.mubr.bf16.gmra.mrb[124].mxu1 %v882_v29 }
 0x1f6   : > { %1737 = vst [vmem:[%s3264_s18 + $0x50] sm:$0xff] %v2410_v35  ;;  %v2411_v40 = vpack.c.bf16 %v1065_v36, %v1063_v33  ;;  %v1011_v41 = vadd.f32 %v1010_v38, %v3255_v9  ;;  %v1012_v42 = vpop.f32.mrb[134].mxu0 }
 0x1f7   : > { %v1013_v43 = vadd.f32 %v1012_v42, %v3253_v8  ;;  %v1014_v44 = vpop.f32.mrb[135].mxu0 }
 0x1f8   : > { %1738 = vst [vmem:[%s3264_s18 + $0x58] sm:$0xff] %v2411_v40  ;;  %v2400_v45 = vpack.c.bf16 %v1011_v41, %v1009_v37  ;;  %v1015_v46 = vadd.f32 %v1014_v44, %v3255_v9  ;;  %v1068_v47 = vpop.f32.mrb[20].mxu1 }
 0x1f9   : > { %v1069_v48 = vadd.f32 %v1068_v47, %v3253_v8  ;;  %v1070_v1 = vpop.f32.mrb[21].mxu1 }
 0x1fa   : > { %1727 = vst [vmem:[%s3264_s18] sm:$0xff] %v2400_v45  ;;  %v2401_v49 = vpack.c.bf16 %v1015_v46, %v1013_v43  ;;  %v1071_v50 = vadd.f32 %v1070_v1, %v3255_v9  ;;  %v1072_v51 = vpop.f32.mrb[22].mxu1 }
 0x1fb   : > { %v1073_v52 = vadd.f32 %v1072_v51, %v3253_v8  ;;  %v1074_v54 = vpop.f32.mrb[23].mxu1 }
 0x1fc   : > { %1728 = vst [vmem:[%s3264_s18 + $0x8] sm:$0xff] %v2401_v49  ;;  %v2412_v55 = vpack.c.bf16 %v1071_v50, %v1069_v48  ;;  %v1075_v56 = vadd.f32 %v1074_v54, %v3255_v9 }
 0x1fe   : > { %1739 = vst [vmem:[%s3264_s18 + $0x60] sm:$0xff] %v2412_v55  ;;  %v2413_v57 = vpack.c.bf16 %v1075_v56, %v1073_v52 }
 0x200   : > { %1740 = vst [vmem:[%s3264_s18 + $0x68] sm:$0xff] %v2413_v57  ;;  %v1078_v58 = vpop.f32.mrb[24].mxu1 }
 0x201   : > { %v1079_v59 = vadd.f32 %v1078_v58, %v3253_v8  ;;  %v1080_v60 = vpop.f32.mrb[25].mxu1 }
 0x202   : > { %v1081_v62 = vadd.f32 %v1080_v60, %v3255_v9  ;;  %v1082_v63 = vpop.f32.mrb[26].mxu1 }
 0x203   : > { %v1083_v0 = vadd.f32 %v1082_v63, %v3253_v8  ;;  %v1084_v2 = vpop.f32.mrb[27].mxu1 }
 0x204   : > { %v2414_v3 = vpack.c.bf16 %v1081_v62, %v1079_v59  ;;  %v1085_v4 = vadd.f32 %v1084_v2, %v3255_v9 }
 0x206   : > { %1741 = vst [vmem:[%s3264_s18 + $0x70] sm:$0xff] %v2414_v3  ;;  %v2415_v5 = vpack.c.bf16 %v1085_v4, %v1083_v0 }
 0x208   : > { %1742 = vst [vmem:[%s3264_s18 + $0x78] sm:$0xff] %v2415_v5  ;;  %v1088_v6 = vpop.f32.mrb[28].mxu1 }
 0x209   : > { %v1089_v7 = vadd.f32 %v1088_v6, %v3253_v8  ;;  %v1090_v53 = vpop.f32.mrb[29].mxu1 }
 0x20a   : > { %v1091_v10 = vadd.f32 %v1090_v53, %v3255_v9  ;;  %v1092_v11 = vpop.f32.mrb[30].mxu1 }
 0x20b   : > { %v1093_v12 = vadd.f32 %v1092_v11, %v3253_v8  ;;  %v1094_v13 = vpop.f32.mrb[31].mxu1 }
 0x20c   : > { %v2416_v14 = vpack.c.bf16 %v1091_v10, %v1089_v7  ;;  %v1095_v15 = vadd.f32 %v1094_v13, %v3255_v9 }
 0x20e   : > { %1743 = vst [vmem:[%s3264_s18 + $0x80] sm:$0xff] %v2416_v14  ;;  %v2417_v16 = vpack.c.bf16 %v1095_v15, %v1093_v12 }
 0x210   : > { %1744 = vst [vmem:[%s3264_s18 + $0x88] sm:$0xff] %v2417_v16  ;;  %v1098_v17 = vpop.f32.mrb[32].mxu1 }
 0x211   : > { %v1099_v18 = vadd.f32 %v1098_v17, %v3253_v8  ;;  %v1100_v19 = vpop.f32.mrb[33].mxu1 }
 0x212   : > { %v1101_v20 = vadd.f32 %v1100_v19, %v3255_v9  ;;  %v1102_v21 = vpop.f32.mrb[34].mxu1 }
 0x213   : > { %v1103_v22 = vadd.f32 %v1102_v21, %v3253_v8  ;;  %v1104_v23 = vpop.f32.mrb[35].mxu1 }
 0x214   : > { %v2418_v24 = vpack.c.bf16 %v1101_v20, %v1099_v18  ;;  %v1105_v25 = vadd.f32 %v1104_v23, %v3255_v9 }
 0x216   : > { %1745 = vst [vmem:[%s3264_s18 + $0x90] sm:$0xff] %v2418_v24  ;;  %v2419_v26 = vpack.c.bf16 %v1105_v25, %v1103_v22 }
 0x218   : > { %1746 = vst [vmem:[%s3264_s18 + $0x98] sm:$0xff] %v2419_v26  ;;  %v1108_v27 = vpop.f32.mrb[36].mxu1 }
 0x219   : > { %v1109_v28 = vadd.f32 %v1108_v27, %v3253_v8  ;;  %v1110_v29 = vpop.f32.mrb[37].mxu1 }
 0x21a   : > { %v1111_v30 = vadd.f32 %v1110_v29, %v3255_v9  ;;  %v1112_v31 = vpop.f32.mrb[38].mxu1 }
 0x21b   : > { %v1113_v32 = vadd.f32 %v1112_v31, %v3253_v8  ;;  %v1114_v39 = vpop.f32.mrb[39].mxu1 }
 0x21c   : > { %v2420_v33 = vpack.c.bf16 %v1111_v30, %v1109_v28  ;;  %v1115_v34 = vadd.f32 %v1114_v39, %v3255_v9 }
 0x21e   : > { %1747 = vst [vmem:[%s3264_s18 + $0xa0] sm:$0xff] %v2420_v33  ;;  %v2421_v35 = vpack.c.bf16 %v1115_v34, %v1113_v32 }
 0x220   : > { %1748 = vst [vmem:[%s3264_s18 + $0xa8] sm:$0xff] %v2421_v35  ;;  %v1118_v36 = vpop.f32.mrb[40].mxu1 }
 0x221   : > { %v1119_v61 = vadd.f32 %v1118_v36, %v3253_v8  ;;  %v1120_v37 = vpop.f32.mrb[41].mxu1 }
 0x222   : > { %v1121_v38 = vadd.f32 %v1120_v37, %v3255_v9  ;;  %v1122_v40 = vpop.f32.mrb[42].mxu1 }
 0x223   : > { %v1123_v41 = vadd.f32 %v1122_v40, %v3253_v8  ;;  %v1124_v42 = vpop.f32.mrb[43].mxu1 }
 0x224   : > { %v2422_v43 = vpack.c.bf16 %v1121_v38, %v1119_v61  ;;  %v1125_v44 = vadd.f32 %v1124_v42, %v3255_v9 }
 0x226   : > { %1749 = vst [vmem:[%s3264_s18 + $0xb0] sm:$0xff] %v2422_v43  ;;  %v2423_v45 = vpack.c.bf16 %v1125_v44, %v1123_v41 }
 0x228   : > { %1750 = vst [vmem:[%s3264_s18 + $0xb8] sm:$0xff] %v2423_v45  ;;  %v1128_v46 = vpop.f32.mrb[44].mxu1 }
 0x229   : > { %v1129_v47 = vadd.f32 %v1128_v46, %v3253_v8  ;;  %v1130_v48 = vpop.f32.mrb[45].mxu1 }
 0x22a   : > { %v1131_v1 = vadd.f32 %v1130_v48, %v3255_v9  ;;  %v1132_v49 = vpop.f32.mrb[46].mxu1 }
 0x22b   : > { %v1133_v50 = vadd.f32 %v1132_v49, %v3253_v8  ;;  %v1134_v51 = vpop.f32.mrb[47].mxu1 }
 0x22c   : > { %v2424_v52 = vpack.c.bf16 %v1131_v1, %v1129_v47  ;;  %v1135_v54 = vadd.f32 %v1134_v51, %v3255_v9 }
 0x22e   : > { %1751 = vst [vmem:[%s3264_s18 + $0xc0] sm:$0xff] %v2424_v52  ;;  %v2425_v55 = vpack.c.bf16 %v1135_v54, %v1133_v50 }
 0x230   : > { %1752 = vst [vmem:[%s3264_s18 + $0xc8] sm:$0xff] %v2425_v55  ;;  %v1138_v56 = vpop.f32.mrb[48].mxu1 }
 0x231   : > { %v1139_v57 = vadd.f32 %v1138_v56, %v3253_v8  ;;  %v1140_v58 = vpop.f32.mrb[49].mxu1 }
 0x232   : > { %v1141_v59 = vadd.f32 %v1140_v58, %v3255_v9  ;;  %v1142_v60 = vpop.f32.mrb[50].mxu1 }
 0x233   : > { %v1143_v62 = vadd.f32 %v1142_v60, %v3253_v8  ;;  %v1144_v63 = vpop.f32.mrb[51].mxu1 }
 0x234   : > { %v2426_v0 = vpack.c.bf16 %v1141_v59, %v1139_v57  ;;  %v1145_v2 = vadd.f32 %v1144_v63, %v3255_v9 }
 0x236   : > { %1753 = vst [vmem:[%s3264_s18 + $0xd0] sm:$0xff] %v2426_v0  ;;  %v2427_v3 = vpack.c.bf16 %v1145_v2, %v1143_v62 }
 0x238   : > { %1754 = vst [vmem:[%s3264_s18 + $0xd8] sm:$0xff] %v2427_v3  ;;  %v1148_v4 = vpop.f32.mrb[52].mxu1 }
 0x239   : > { %v1149_v5 = vadd.f32 %v1148_v4, %v3253_v8  ;;  %v1150_v6 = vpop.f32.mrb[53].mxu1 }
 0x23a   : > { %v1151_v7 = vadd.f32 %v1150_v6, %v3255_v9  ;;  %v1152_v53 = vpop.f32.mrb[54].mxu1 }
 0x23b   : > { %v1153_v10 = vadd.f32 %v1152_v53, %v3253_v8  ;;  %v1154_v11 = vpop.f32.mrb[55].mxu1 }
 0x23c   : > { %v2428_v12 = vpack.c.bf16 %v1151_v7, %v1149_v5  ;;  %v1155_v13 = vadd.f32 %v1154_v11, %v3255_v9 }
 0x23e   : > { %1755 = vst [vmem:[%s3264_s18 + $0xe0] sm:$0xff] %v2428_v12  ;;  %v2429_v14 = vpack.c.bf16 %v1155_v13, %v1153_v10 }
 0x240   : > { %1756 = vst [vmem:[%s3264_s18 + $0xe8] sm:$0xff] %v2429_v14  ;;  %v1158_v15 = vpop.f32.mrb[56].mxu1 }
 0x241   : > { %v1159_v16 = vadd.f32 %v1158_v15, %v3253_v8  ;;  %v1160_v17 = vpop.f32.mrb[57].mxu1 }
 0x242   : > { %v1161_v18 = vadd.f32 %v1160_v17, %v3255_v9  ;;  %v1162_v19 = vpop.f32.mrb[58].mxu1 }
 0x243   : > { %v1163_v20 = vadd.f32 %v1162_v19, %v3253_v8  ;;  %v1164_v21 = vpop.f32.mrb[59].mxu1 }
 0x244   : > { %v2430_v22 = vpack.c.bf16 %v1161_v18, %v1159_v16  ;;  %v1165_v23 = vadd.f32 %v1164_v21, %v3255_v9 }
 0x246   : > { %1757 = vst [vmem:[%s3264_s18 + $0xf0] sm:$0xff] %v2430_v22  ;;  %v2431_v24 = vpack.c.bf16 %v1165_v23, %v1163_v20 }
 0x248   : > { %1758 = vst [vmem:[%s3264_s18 + $0xf8] sm:$0xff] %v2431_v24  ;;  %v1168_v25 = vpop.f32.mrb[60].mxu1 }
 0x249   : > { %v1169_v26 = vadd.f32 %v1168_v25, %v3253_v8  ;;  %v1170_v27 = vpop.f32.mrb[61].mxu1 }
 0x24a   : > { %v1171_v28 = vadd.f32 %v1170_v27, %v3255_v9  ;;  %v1172_v29 = vpop.f32.mrb[62].mxu1 }
 0x24b   : > { %v1173_v30 = vadd.f32 %v1172_v29, %v3253_v8  ;;  %v1174_v31 = vpop.f32.mrb[63].mxu1 }
 0x24c   : > { %v2432_v32 = vpack.c.bf16 %v1171_v28, %v1169_v26  ;;  %v1175_v39 = vadd.f32 %v1174_v31, %v3255_v9 }
 0x24e   : > { %1759 = vst [vmem:[%s3264_s18 + $0x100] sm:$0xff] %v2432_v32  ;;  %v2433_v33 = vpack.c.bf16 %v1175_v39, %v1173_v30 }
 0x250   : > { %1760 = vst [vmem:[%s3264_s18 + $0x108] sm:$0xff] %v2433_v33  ;;  %v1178_v34 = vpop.f32.mrb[64].mxu1 }
 0x251   : > { %v1179_v35 = vadd.f32 %v1178_v34, %v3253_v8  ;;  %v1180_v36 = vpop.f32.mrb[65].mxu1 }
 0x252   : > { %v1181_v61 = vadd.f32 %v1180_v36, %v3255_v9  ;;  %v1182_v37 = vpop.f32.mrb[66].mxu1 }
 0x253   : > { %v1183_v38 = vadd.f32 %v1182_v37, %v3253_v8  ;;  %v1184_v40 = vpop.f32.mrb[67].mxu1 }
 0x254   : > { %v2434_v41 = vpack.c.bf16 %v1181_v61, %v1179_v35  ;;  %v1185_v42 = vadd.f32 %v1184_v40, %v3255_v9 }
 0x256   : > { %1761 = vst [vmem:[%s3264_s18 + $0x110] sm:$0xff] %v2434_v41  ;;  %v2435_v43 = vpack.c.bf16 %v1185_v42, %v1183_v38 }
 0x258   : > { %1762 = vst [vmem:[%s3264_s18 + $0x118] sm:$0xff] %v2435_v43  ;;  %v1188_v44 = vpop.f32.mrb[68].mxu1 }
 0x259   : > { %v1189_v45 = vadd.f32 %v1188_v44, %v3253_v8  ;;  %v1190_v46 = vpop.f32.mrb[69].mxu1 }
 0x25a   : > { %v1191_v47 = vadd.f32 %v1190_v46, %v3255_v9  ;;  %v1192_v48 = vpop.f32.mrb[70].mxu1 }
 0x25b   : > { %v1193_v1 = vadd.f32 %v1192_v48, %v3253_v8  ;;  %v1194_v49 = vpop.f32.mrb[71].mxu1 }
 0x25c   : > { %v2436_v50 = vpack.c.bf16 %v1191_v47, %v1189_v45  ;;  %v1195_v51 = vadd.f32 %v1194_v49, %v3255_v9 }
 0x25e   : > { %1763 = vst [vmem:[%s3264_s18 + $0x120] sm:$0xff] %v2436_v50  ;;  %v2437_v52 = vpack.c.bf16 %v1195_v51, %v1193_v1 }
 0x260   : > { %1764 = vst [vmem:[%s3264_s18 + $0x128] sm:$0xff] %v2437_v52  ;;  %v1198_v54 = vpop.f32.mrb[72].mxu1 }
 0x261   : > { %v1199_v55 = vadd.f32 %v1198_v54, %v3253_v8  ;;  %v1200_v56 = vpop.f32.mrb[73].mxu1 }
 0x262   : > { %v1201_v57 = vadd.f32 %v1200_v56, %v3255_v9  ;;  %v1202_v58 = vpop.f32.mrb[74].mxu1 }
 0x263   : > { %v1203_v59 = vadd.f32 %v1202_v58, %v3253_v8  ;;  %v1204_v60 = vpop.f32.mrb[75].mxu1 }
 0x264   : > { %v2438_v62 = vpack.c.bf16 %v1201_v57, %v1199_v55  ;;  %v1205_v63 = vadd.f32 %v1204_v60, %v3255_v9 }
 0x266   : > { %1765 = vst [vmem:[%s3264_s18 + $0x130] sm:$0xff] %v2438_v62  ;;  %v2439_v0 = vpack.c.bf16 %v1205_v63, %v1203_v59 }
 0x268   : > { %1766 = vst [vmem:[%s3264_s18 + $0x138] sm:$0xff] %v2439_v0  ;;  %v1208_v2 = vpop.f32.mrb[76].mxu1 }
 0x269   : > { %v1209_v3 = vadd.f32 %v1208_v2, %v3253_v8  ;;  %v1210_v4 = vpop.f32.mrb[77].mxu1 }
 0x26a   : > { %v1211_v5 = vadd.f32 %v1210_v4, %v3255_v9  ;;  %v1212_v6 = vpop.f32.mrb[78].mxu1 }
 0x26b   : > { %v1213_v7 = vadd.f32 %v1212_v6, %v3253_v8  ;;  %v1214_v53 = vpop.f32.mrb[79].mxu1 }
 0x26c   : > { %v2440_v10 = vpack.c.bf16 %v1211_v5, %v1209_v3  ;;  %v1215_v11 = vadd.f32 %v1214_v53, %v3255_v9 }
 0x26e   : > { %1767 = vst [vmem:[%s3264_s18 + $0x140] sm:$0xff] %v2440_v10  ;;  %v2441_v12 = vpack.c.bf16 %v1215_v11, %v1213_v7 }
 0x270   : > { %1768 = vst [vmem:[%s3264_s18 + $0x148] sm:$0xff] %v2441_v12  ;;  %v1218_v13 = vpop.f32.mrb[80].mxu1 }
 0x271   : > { %v1219_v14 = vadd.f32 %v1218_v13, %v3253_v8  ;;  %v1220_v15 = vpop.f32.mrb[81].mxu1 }
 0x272   : > { %v1221_v16 = vadd.f32 %v1220_v15, %v3255_v9  ;;  %v1222_v17 = vpop.f32.mrb[82].mxu1 }
 0x273   : > { %v1223_v18 = vadd.f32 %v1222_v17, %v3253_v8  ;;  %v1224_v19 = vpop.f32.mrb[83].mxu1 }
 0x274   : > { %v2442_v20 = vpack.c.bf16 %v1221_v16, %v1219_v14  ;;  %v1225_v21 = vadd.f32 %v1224_v19, %v3255_v9 }
 0x276   : > { %1769 = vst [vmem:[%s3264_s18 + $0x150] sm:$0xff] %v2442_v20  ;;  %v2443_v22 = vpack.c.bf16 %v1225_v21, %v1223_v18 }
 0x278   : > { %1770 = vst [vmem:[%s3264_s18 + $0x158] sm:$0xff] %v2443_v22  ;;  %v1228_v23 = vpop.f32.mrb[84].mxu1 }
 0x279   : > { %v1229_v24 = vadd.f32 %v1228_v23, %v3253_v8  ;;  %v1230_v25 = vpop.f32.mrb[85].mxu1 }
 0x27a   : > { %v1231_v26 = vadd.f32 %v1230_v25, %v3255_v9  ;;  %v1232_v27 = vpop.f32.mrb[86].mxu1 }
 0x27b   : > { %v1233_v28 = vadd.f32 %v1232_v27, %v3253_v8  ;;  %v1234_v29 = vpop.f32.mrb[87].mxu1 }
 0x27c   : > { %v2444_v30 = vpack.c.bf16 %v1231_v26, %v1229_v24  ;;  %v1235_v31 = vadd.f32 %v1234_v29, %v3255_v9 }
 0x27e   : > { %1771 = vst [vmem:[%s3264_s18 + $0x160] sm:$0xff] %v2444_v30  ;;  %v2445_v32 = vpack.c.bf16 %v1235_v31, %v1233_v28 }
 0x280   : > { %1772 = vst [vmem:[%s3264_s18 + $0x168] sm:$0xff] %v2445_v32  ;;  %v1238_v39 = vpop.f32.mrb[88].mxu1 }
 0x281   : > { %v1239_v33 = vadd.f32 %v1238_v39, %v3253_v8  ;;  %v1240_v34 = vpop.f32.mrb[89].mxu1 }
 0x282   : > { %v1241_v35 = vadd.f32 %v1240_v34, %v3255_v9  ;;  %v1242_v36 = vpop.f32.mrb[90].mxu1 }
 0x283   : > { %v1243_v61 = vadd.f32 %v1242_v36, %v3253_v8  ;;  %v1244_v37 = vpop.f32.mrb[91].mxu1 }
 0x284   : > { %v2446_v38 = vpack.c.bf16 %v1241_v35, %v1239_v33  ;;  %v1245_v40 = vadd.f32 %v1244_v37, %v3255_v9 }
 0x286   : > { %1773 = vst [vmem:[%s3264_s18 + $0x170] sm:$0xff] %v2446_v38  ;;  %v2447_v41 = vpack.c.bf16 %v1245_v40, %v1243_v61 }
 0x288   : > { %1774 = vst [vmem:[%s3264_s18 + $0x178] sm:$0xff] %v2447_v41  ;;  %v1248_v42 = vpop.f32.mrb[92].mxu1 }
 0x289   : > { %v1249_v43 = vadd.f32 %v1248_v42, %v3253_v8  ;;  %v1250_v44 = vpop.f32.mrb[93].mxu1 }
 0x28a   : > { %v1251_v45 = vadd.f32 %v1250_v44, %v3255_v9  ;;  %v1252_v46 = vpop.f32.mrb[94].mxu1 }
 0x28b   : > { %v1253_v47 = vadd.f32 %v1252_v46, %v3253_v8  ;;  %v1254_v48 = vpop.f32.mrb[95].mxu1 }
 0x28c   : > { %v2448_v1 = vpack.c.bf16 %v1251_v45, %v1249_v43  ;;  %v1255_v49 = vadd.f32 %v1254_v48, %v3255_v9 }
 0x28e   : > { %1775 = vst [vmem:[%s3264_s18 + $0x180] sm:$0xff] %v2448_v1  ;;  %v2449_v50 = vpack.c.bf16 %v1255_v49, %v1253_v47 }
 0x290   : > { %1776 = vst [vmem:[%s3264_s18 + $0x188] sm:$0xff] %v2449_v50  ;;  %v1258_v51 = vpop.f32.mrb[96].mxu1 }
 0x291   : > { %v1259_v52 = vadd.f32 %v1258_v51, %v3253_v8  ;;  %v1260_v54 = vpop.f32.mrb[97].mxu1 }
 0x292   : > { %v1261_v55 = vadd.f32 %v1260_v54, %v3255_v9  ;;  %v1262_v56 = vpop.f32.mrb[98].mxu1 }
 0x293   : > { %v1263_v57 = vadd.f32 %v1262_v56, %v3253_v8  ;;  %v1264_v58 = vpop.f32.mrb[99].mxu1 }
 0x294   : > { %v2450_v59 = vpack.c.bf16 %v1261_v55, %v1259_v52  ;;  %v1265_v60 = vadd.f32 %v1264_v58, %v3255_v9 }
 0x296   : > { %1777 = vst [vmem:[%s3264_s18 + $0x190] sm:$0xff] %v2450_v59  ;;  %v2451_v62 = vpack.c.bf16 %v1265_v60, %v1263_v57 }
 0x298   : > { %1778 = vst [vmem:[%s3264_s18 + $0x198] sm:$0xff] %v2451_v62  ;;  %v1268_v63 = vpop.f32.mrb[100].mxu1 }
 0x299   : > { %v1269_v0 = vadd.f32 %v1268_v63, %v3253_v8  ;;  %v1270_v2 = vpop.f32.mrb[101].mxu1 }
 0x29a   : > { %v1271_v3 = vadd.f32 %v1270_v2, %v3255_v9  ;;  %v1272_v4 = vpop.f32.mrb[102].mxu1 }
 0x29b   : > { %v1273_v5 = vadd.f32 %v1272_v4, %v3253_v8  ;;  %v1274_v6 = vpop.f32.mrb[103].mxu1 }
 0x29c   : > { %v2452_v7 = vpack.c.bf16 %v1271_v3, %v1269_v0  ;;  %v1275_v53 = vadd.f32 %v1274_v6, %v3255_v9 }
 0x29e   : > { %1779 = vst [vmem:[%s3264_s18 + $0x1a0] sm:$0xff] %v2452_v7  ;;  %v2453_v10 = vpack.c.bf16 %v1275_v53, %v1273_v5 }
 0x2a0   : > { %1780 = vst [vmem:[%s3264_s18 + $0x1a8] sm:$0xff] %v2453_v10  ;;  %v1278_v11 = vpop.f32.mrb[104].mxu1 }
 0x2a1   : > { %v1279_v12 = vadd.f32 %v1278_v11, %v3253_v8  ;;  %v1280_v13 = vpop.f32.mrb[105].mxu1 }
 0x2a2   : > { %v1281_v14 = vadd.f32 %v1280_v13, %v3255_v9  ;;  %v1282_v15 = vpop.f32.mrb[106].mxu1 }
 0x2a3   : > { %v1283_v16 = vadd.f32 %v1282_v15, %v3253_v8  ;;  %v1284_v17 = vpop.f32.mrb[107].mxu1 }
 0x2a4   : > { %v2454_v18 = vpack.c.bf16 %v1281_v14, %v1279_v12  ;;  %v1285_v19 = vadd.f32 %v1284_v17, %v3255_v9 }
 0x2a6   : > { %1781 = vst [vmem:[%s3264_s18 + $0x1b0] sm:$0xff] %v2454_v18  ;;  %v2455_v20 = vpack.c.bf16 %v1285_v19, %v1283_v16 }
 0x2a8   : > { %1782 = vst [vmem:[%s3264_s18 + $0x1b8] sm:$0xff] %v2455_v20  ;;  %v1288_v21 = vpop.f32.mrb[108].mxu1 }
 0x2a9   : > { %v1289_v22 = vadd.f32 %v1288_v21, %v3253_v8  ;;  %v1290_v23 = vpop.f32.mrb[109].mxu1 }
 0x2aa   : > { %v1291_v24 = vadd.f32 %v1290_v23, %v3255_v9  ;;  %v1292_v25 = vpop.f32.mrb[110].mxu1 }
 0x2ab   : > { %v1293_v26 = vadd.f32 %v1292_v25, %v3253_v8  ;;  %v1294_v27 = vpop.f32.mrb[111].mxu1 }
 0x2ac   : > { %v2456_v28 = vpack.c.bf16 %v1291_v24, %v1289_v22  ;;  %v1295_v29 = vadd.f32 %v1294_v27, %v3255_v9 }
 0x2ae   : > { %1783 = vst [vmem:[%s3264_s18 + $0x1c0] sm:$0xff] %v2456_v28  ;;  %v2457_v30 = vpack.c.bf16 %v1295_v29, %v1293_v26 }
 0x2b0   : > { %1784 = vst [vmem:[%s3264_s18 + $0x1c8] sm:$0xff] %v2457_v30  ;;  %v1298_v31 = vpop.f32.mrb[112].mxu1 }
 0x2b1   : > { %v1299_v32 = vadd.f32 %v1298_v31, %v3253_v8  ;;  %v1300_v39 = vpop.f32.mrb[113].mxu1 }
 0x2b2   : > { %v1301_v33 = vadd.f32 %v1300_v39, %v3255_v9  ;;  %v1302_v34 = vpop.f32.mrb[114].mxu1 }
 0x2b3   : > { %v1303_v35 = vadd.f32 %v1302_v34, %v3253_v8  ;;  %v1304_v36 = vpop.f32.mrb[115].mxu1 }
 0x2b4   : > { %v2458_v61 = vpack.c.bf16 %v1301_v33, %v1299_v32  ;;  %v1305_v37 = vadd.f32 %v1304_v36, %v3255_v9 }
 0x2b6   : > { %1785 = vst [vmem:[%s3264_s18 + $0x1d0] sm:$0xff] %v2458_v61  ;;  %v2459_v38 = vpack.c.bf16 %v1305_v37, %v1303_v35 }
 0x2b8   : > { %1786 = vst [vmem:[%s3264_s18 + $0x1d8] sm:$0xff] %v2459_v38  ;;  %v1308_v40 = vpop.f32.mrb[116].mxu1 }
 0x2b9   : > { %v1309_v41 = vadd.f32 %v1308_v40, %v3253_v8  ;;  %v1310_v42 = vpop.f32.mrb[117].mxu1 }
 0x2ba   : > { %v1311_v43 = vadd.f32 %v1310_v42, %v3255_v9  ;;  %v1312_v44 = vpop.f32.mrb[118].mxu1 }
 0x2bb   : > { %v1313_v45 = vadd.f32 %v1312_v44, %v3253_v8  ;;  %v1314_v46 = vpop.f32.mrb[119].mxu1 }
 0x2bc   : > { %v2460_v47 = vpack.c.bf16 %v1311_v43, %v1309_v41  ;;  %v1315_v48 = vadd.f32 %v1314_v46, %v3255_v9 }
 0x2be   : > { %1787 = vst [vmem:[%s3264_s18 + $0x1e0] sm:$0xff] %v2460_v47  ;;  %v2461_v1 = vpack.c.bf16 %v1315_v48, %v1313_v45 }
 0x2c0   : > { %1788 = vst [vmem:[%s3264_s18 + $0x1e8] sm:$0xff] %v2461_v1  ;;  %v1318_v49 = vpop.f32.mrb[120].mxu1 }
 0x2c1   : > { %v1319_v50 = vadd.f32 %v1318_v49, %v3253_v8  ;;  %v1320_v51 = vpop.f32.mrb[121].mxu1 }
 0x2c2   : > { %v1321_v52 = vadd.f32 %v1320_v51, %v3255_v9  ;;  %v1322_v54 = vpop.f32.mrb[122].mxu1 }
 0x2c3   : > { %v1323_v55 = vadd.f32 %v1322_v54, %v3253_v8  ;;  %v1324_v56 = vpop.f32.mrb[123].mxu1 }
 0x2c4   : > { %v2462_v57 = vpack.c.bf16 %v1321_v52, %v1319_v50  ;;  %v1325_v58 = vadd.f32 %v1324_v56, %v3255_v9 }
 0x2c6   : > { %1789 = vst [vmem:[%s3264_s18 + $0x1f0] sm:$0xff] %v2462_v57  ;;  %v2463_v59 = vpack.c.bf16 %v1325_v58, %v1323_v55 }
 0x2c8   : > { %1790 = vst [vmem:[%s3264_s18 + $0x1f8] sm:$0xff] %v2463_v59  ;;  %v1328_v60 = vpop.f32.mrb[124].mxu1  ;;  %1798 = sbr.rel (!%p2922_p4) target bundleno = 791 (0x317), region = 44 }
 0x2c9   : > { %v1329_v62 = vadd.f32 %v1328_v60, %v3253_v8  ;;  %v1330_v63 = vpop.f32.mrb[125].mxu1 }
 0x2ca   : > { %v1331_v0 = vadd.f32 %v1330_v63, %v3255_v9  ;;  %v1332_v2 = vpop.f32.mrb[126].mxu1 }
 0x2cb   : > { %v1333_v3 = vpop.f32.mrb[127].mxu1 }
 0x2cc   : > { %v2464_v4 = vpack.c.bf16 %v1331_v0, %v1329_v62 }
 0x2ce   : > { %1791 = vst [vmem:[%s3264_s18 + $0x200] sm:$0xff] %v2464_v4 }
 0x2cf   : > { %s3689_s15 = smov (!%p1801_p8, %s1800_s15), 65 }
 0x2d0   : > { %s2465_s24 = sshll.u32 %s3689_s15, 7 }
 0x2d1   : > { %p2388_p9 = scmp.eq.s32.totalorder %s2465_s24, 0 }
 0x2d2   : > { %s3480_s27 = sshrl.u32 (!%p2388_p9), %s3689_s15, 6 }
 0x2d3   : > { %1811 = sbr.rel (%p2388_p9) target bundleno = 791 (0x317), region = 48  ;;  %p2389_p10 = scmp.le.s32.totalorder (!%p2388_p9), %s3480_s27, 0 }
 0x2da   : > { %2217 = sbr.rel (%p2389_p10) target bundleno = 770 (0x302), region = 124  ;;  %s3680_s21 = smov (!%p2389_p10), %s3474_s23 }
 0x2db   : > { %s3681_s26 = smov (!%p2389_p10), %s3264_s18  ;;  %s3489_s6 = smov (!%p2389_p10), 0  }
 0x2dc   : > { %s3491_s28 = smov (!%p2389_p10), 0  }
 0x2e1 LB: >> { %v1999_v8 = vld [vmem:[%s2838_s26] sm:$0xff]  ;;  %v2001_v9 = vld [vmem:[%s2838_s26 + $0x8] sm:$0xff]  ;;  %v2003_v5 = vld [vmem:[%s2838_s26 + $0x10] sm:$0xff]  ;;  %s2127_s29 = sadd.s32 1, %s2842_s6  ;;  %s1993_s28 = sadd.s32 1, %s2846_s28   ;;  %s2846_s28 = sphi %s3491_s28, %s1993_s28   ;;  %s2842_s6 = sphi %s3489_s6, %s3684_s6   ;;  %s2838_s26 = sphi %s3681_s26, %s3683_s26   ;;  %s2834_s21 = sphi %s3680_s21, %s3682_s21  }
 0x2e2   : >> { %2000 = vst [vmem:[%s2834_s21] sm:$0xff] %v1999_v8  ;;  %2002 = vst [vmem:[%s2834_s21 + $0x8] sm:$0xff] %v2001_v9  ;;  %v2005_v6 = vld [vmem:[%s2838_s26 + $0x18] sm:$0xff]  ;;  %v2007_v7 = vld [vmem:[%s2838_s26 + $0x20] sm:$0xff]  ;;  %p2128_p11 = scmp.ge.s32.totalorder %s2127_s29, %s3480_s27  ;;  %p1992_p12 = scmp.ge.s32.totalorder %s1993_s28, %s3480_s27 }
 0x2e3   : >> { %2004 = vst [vmem:[%s2834_s21 + $0x10] sm:$0xff] %v2003_v5  ;;  %v2009_v53 = vld [vmem:[%s2838_s26 + $0x28] sm:$0xff]  ;;  %2006 = vst [vmem:[%s2834_s21 + $0x18] sm:$0xff] %v2005_v6  ;;  %v2011_v10 = vld [vmem:[%s2838_s26 + $0x30] sm:$0xff] }
 0x2e4   : >> { %2008 = vst [vmem:[%s2834_s21 + $0x20] sm:$0xff] %v2007_v7  ;;  %2010 = vst [vmem:[%s2834_s21 + $0x28] sm:$0xff] %v2009_v53  ;;  %v2013_v11 = vld [vmem:[%s2838_s26 + $0x38] sm:$0xff]  ;;  %v2015_v12 = vld [vmem:[%s2838_s26 + $0x40] sm:$0xff]  ;;  %s3691_s29 = smov (%p2128_p11, %s2127_s29), 0 }
 0x2e5   : >> { %2012 = vst [vmem:[%s2834_s21 + $0x30] sm:$0xff] %v2011_v10  ;;  %2014 = vst [vmem:[%s2834_s21 + $0x38] sm:$0xff] %v2013_v11  ;;  %v2017_v13 = vld [vmem:[%s2838_s26 + $0x48] sm:$0xff]  ;;  %v2019_v14 = vld [vmem:[%s2838_s26 + $0x50] sm:$0xff]  ;;  %s2390_s30 = sshll.u32 %s3691_s29, 9  ;;  %s3684_s6 = smov %s3691_s29 }
 0x2e6   : >> { %2016 = vst [vmem:[%s2834_s21 + $0x40] sm:$0xff] %v2015_v12  ;;  %v2021_v15 = vld [vmem:[%s2838_s26 + $0x58] sm:$0xff]  ;;  %2018 = vst [vmem:[%s2834_s21 + $0x48] sm:$0xff] %v2017_v13  ;;  %v2023_v16 = vld [vmem:[%s2838_s26 + $0x60] sm:$0xff]  ;;  %s3547_s7 = scalar_lea.vmem %s3264_s18, %s2390_s30 [#allocation2]   ;;  %s3550_s8 = scalar_lea.vmem %s3474_s23, %s2390_s30  }
 0x2e7   : >> { %2020 = vst [vmem:[%s2834_s21 + $0x50] sm:$0xff] %v2019_v14  ;;  %2022 = vst [vmem:[%s2834_s21 + $0x58] sm:$0xff] %v2021_v15  ;;  %v2025_v17 = vld [vmem:[%s2838_s26 + $0x68] sm:$0xff]  ;;  %v2027_v18 = vld [vmem:[%s2838_s26 + $0x70] sm:$0xff] }
 0x2e8   : >> { %2024 = vst [vmem:[%s2834_s21 + $0x60] sm:$0xff] %v2023_v16  ;;  %2026 = vst [vmem:[%s2834_s21 + $0x68] sm:$0xff] %v2025_v17  ;;  %v2029_v19 = vld [vmem:[%s2838_s26 + $0x78] sm:$0xff]  ;;  %v2031_v20 = vld [vmem:[%s2838_s26 + $0x80] sm:$0xff] }
 0x2e9   : >> { %2028 = vst [vmem:[%s2834_s21 + $0x70] sm:$0xff] %v2027_v18  ;;  %v2033_v21 = vld [vmem:[%s2838_s26 + $0x88] sm:$0xff]  ;;  %2030 = vst [vmem:[%s2834_s21 + $0x78] sm:$0xff] %v2029_v19  ;;  %v2035_v22 = vld [vmem:[%s2838_s26 + $0x90] sm:$0xff] }
 0x2ea   : >> { %2032 = vst [vmem:[%s2834_s21 + $0x80] sm:$0xff] %v2031_v20  ;;  %2034 = vst [vmem:[%s2834_s21 + $0x88] sm:$0xff] %v2033_v21  ;;  %v2037_v23 = vld [vmem:[%s2838_s26 + $0x98] sm:$0xff]  ;;  %v2039_v24 = vld [vmem:[%s2838_s26 + $0xa0] sm:$0xff] }
 0x2eb   : >> { %2036 = vst [vmem:[%s2834_s21 + $0x90] sm:$0xff] %v2035_v22  ;;  %2038 = vst [vmem:[%s2834_s21 + $0x98] sm:$0xff] %v2037_v23  ;;  %v2041_v25 = vld [vmem:[%s2838_s26 + $0xa8] sm:$0xff]  ;;  %v2043_v26 = vld [vmem:[%s2838_s26 + $0xb0] sm:$0xff] }
 0x2ec   : >> { %2040 = vst [vmem:[%s2834_s21 + $0xa0] sm:$0xff] %v2039_v24  ;;  %v2045_v27 = vld [vmem:[%s2838_s26 + $0xb8] sm:$0xff]  ;;  %2042 = vst [vmem:[%s2834_s21 + $0xa8] sm:$0xff] %v2041_v25  ;;  %v2047_v28 = vld [vmem:[%s2838_s26 + $0xc0] sm:$0xff] }
 0x2ed   : >> { %2044 = vst [vmem:[%s2834_s21 + $0xb0] sm:$0xff] %v2043_v26  ;;  %2046 = vst [vmem:[%s2834_s21 + $0xb8] sm:$0xff] %v2045_v27  ;;  %v2049_v29 = vld [vmem:[%s2838_s26 + $0xc8] sm:$0xff]  ;;  %v2051_v30 = vld [vmem:[%s2838_s26 + $0xd0] sm:$0xff] }
 0x2ee   : >> { %2048 = vst [vmem:[%s2834_s21 + $0xc0] sm:$0xff] %v2047_v28  ;;  %2050 = vst [vmem:[%s2834_s21 + $0xc8] sm:$0xff] %v2049_v29  ;;  %v2053_v31 = vld [vmem:[%s2838_s26 + $0xd8] sm:$0xff]  ;;  %v2055_v32 = vld [vmem:[%s2838_s26 + $0xe0] sm:$0xff] }
 0x2ef   : >> { %2052 = vst [vmem:[%s2834_s21 + $0xd0] sm:$0xff] %v2051_v30  ;;  %v2057_v39 = vld [vmem:[%s2838_s26 + $0xe8] sm:$0xff]  ;;  %2054 = vst [vmem:[%s2834_s21 + $0xd8] sm:$0xff] %v2053_v31  ;;  %v2059_v33 = vld [vmem:[%s2838_s26 + $0xf0] sm:$0xff] }
 0x2f0   : >> { %2056 = vst [vmem:[%s2834_s21 + $0xe0] sm:$0xff] %v2055_v32  ;;  %2058 = vst [vmem:[%s2834_s21 + $0xe8] sm:$0xff] %v2057_v39  ;;  %v2061_v34 = vld [vmem:[%s2838_s26 + $0xf8] sm:$0xff]  ;;  %v2063_v35 = vld [vmem:[%s2838_s26 + $0x100] sm:$0xff] }
 0x2f1   : >> { %2060 = vst [vmem:[%s2834_s21 + $0xf0] sm:$0xff] %v2059_v33  ;;  %2062 = vst [vmem:[%s2834_s21 + $0xf8] sm:$0xff] %v2061_v34  ;;  %v2065_v36 = vld [vmem:[%s2838_s26 + $0x108] sm:$0xff]  ;;  %v2067_v61 = vld [vmem:[%s2838_s26 + $0x110] sm:$0xff] }
 0x2f2   : >> { %2064 = vst [vmem:[%s2834_s21 + $0x100] sm:$0xff] %v2063_v35  ;;  %v2069_v37 = vld [vmem:[%s2838_s26 + $0x118] sm:$0xff]  ;;  %2066 = vst [vmem:[%s2834_s21 + $0x108] sm:$0xff] %v2065_v36  ;;  %v2071_v38 = vld [vmem:[%s2838_s26 + $0x120] sm:$0xff] }
 0x2f3   : >> { %2068 = vst [vmem:[%s2834_s21 + $0x110] sm:$0xff] %v2067_v61  ;;  %2070 = vst [vmem:[%s2834_s21 + $0x118] sm:$0xff] %v2069_v37  ;;  %v2073_v40 = vld [vmem:[%s2838_s26 + $0x128] sm:$0xff]  ;;  %v2075_v41 = vld [vmem:[%s2838_s26 + $0x130] sm:$0xff] }
 0x2f4   : >> { %2072 = vst [vmem:[%s2834_s21 + $0x120] sm:$0xff] %v2071_v38  ;;  %2074 = vst [vmem:[%s2834_s21 + $0x128] sm:$0xff] %v2073_v40  ;;  %v2077_v42 = vld [vmem:[%s2838_s26 + $0x138] sm:$0xff]  ;;  %v2079_v43 = vld [vmem:[%s2838_s26 + $0x140] sm:$0xff] }
 0x2f5   : >> { %2076 = vst [vmem:[%s2834_s21 + $0x130] sm:$0xff] %v2075_v41  ;;  %v2081_v44 = vld [vmem:[%s2838_s26 + $0x148] sm:$0xff]  ;;  %2078 = vst [vmem:[%s2834_s21 + $0x138] sm:$0xff] %v2077_v42  ;;  %v2083_v45 = vld [vmem:[%s2838_s26 + $0x150] sm:$0xff] }
 0x2f6   : >> { %2080 = vst [vmem:[%s2834_s21 + $0x140] sm:$0xff] %v2079_v43  ;;  %2082 = vst [vmem:[%s2834_s21 + $0x148] sm:$0xff] %v2081_v44  ;;  %v2085_v46 = vld [vmem:[%s2838_s26 + $0x158] sm:$0xff]  ;;  %v2087_v47 = vld [vmem:[%s2838_s26 + $0x160] sm:$0xff] }
 0x2f7   : >> { %2084 = vst [vmem:[%s2834_s21 + $0x150] sm:$0xff] %v2083_v45  ;;  %2086 = vst [vmem:[%s2834_s21 + $0x158] sm:$0xff] %v2085_v46  ;;  %v2089_v48 = vld [vmem:[%s2838_s26 + $0x168] sm:$0xff]  ;;  %v2091_v1 = vld [vmem:[%s2838_s26 + $0x170] sm:$0xff] }
 0x2f8   : >> { %2088 = vst [vmem:[%s2834_s21 + $0x160] sm:$0xff] %v2087_v47  ;;  %v2093_v49 = vld [vmem:[%s2838_s26 + $0x178] sm:$0xff]  ;;  %2090 = vst [vmem:[%s2834_s21 + $0x168] sm:$0xff] %v2089_v48  ;;  %v2095_v50 = vld [vmem:[%s2838_s26 + $0x180] sm:$0xff] }
 0x2f9   : >> { %2092 = vst [vmem:[%s2834_s21 + $0x170] sm:$0xff] %v2091_v1  ;;  %2094 = vst [vmem:[%s2834_s21 + $0x178] sm:$0xff] %v2093_v49  ;;  %v2097_v51 = vld [vmem:[%s2838_s26 + $0x188] sm:$0xff]  ;;  %v2099_v52 = vld [vmem:[%s2838_s26 + $0x190] sm:$0xff] }
 0x2fa   : >> { %2096 = vst [vmem:[%s2834_s21 + $0x180] sm:$0xff] %v2095_v50  ;;  %2098 = vst [vmem:[%s2834_s21 + $0x188] sm:$0xff] %v2097_v51  ;;  %v2101_v54 = vld [vmem:[%s2838_s26 + $0x198] sm:$0xff]  ;;  %v2103_v55 = vld [vmem:[%s2838_s26 + $0x1a0] sm:$0xff] }
 0x2fb   : >> { %2100 = vst [vmem:[%s2834_s21 + $0x190] sm:$0xff] %v2099_v52  ;;  %v2105_v56 = vld [vmem:[%s2838_s26 + $0x1a8] sm:$0xff]  ;;  %2102 = vst [vmem:[%s2834_s21 + $0x198] sm:$0xff] %v2101_v54  ;;  %v2107_v57 = vld [vmem:[%s2838_s26 + $0x1b0] sm:$0xff]  ;;  %1995 = sbr.rel (!%p1992_p12) target bundleno = 737 (0x2e1), region = 130 }
 0x2fc   : >> { %2104 = vst [vmem:[%s2834_s21 + $0x1a0] sm:$0xff] %v2103_v55  ;;  %2106 = vst [vmem:[%s2834_s21 + $0x1a8] sm:$0xff] %v2105_v56  ;;  %v2109_v58 = vld [vmem:[%s2838_s26 + $0x1b8] sm:$0xff]  ;;  %v2111_v59 = vld [vmem:[%s2838_s26 + $0x1c0] sm:$0xff] }
 0x2fd   : >> { %2108 = vst [vmem:[%s2834_s21 + $0x1b0] sm:$0xff] %v2107_v57  ;;  %2110 = vst [vmem:[%s2834_s21 + $0x1b8] sm:$0xff] %v2109_v58  ;;  %v2113_v60 = vld [vmem:[%s2838_s26 + $0x1c8] sm:$0xff]  ;;  %v2115_v62 = vld [vmem:[%s2838_s26 + $0x1d0] sm:$0xff] }
 0x2fe   : >> { %2112 = vst [vmem:[%s2834_s21 + $0x1c0] sm:$0xff] %v2111_v59  ;;  %v2117_v63 = vld [vmem:[%s2838_s26 + $0x1d8] sm:$0xff]  ;;  %2114 = vst [vmem:[%s2834_s21 + $0x1c8] sm:$0xff] %v2113_v60  ;;  %v2119_v0 = vld [vmem:[%s2838_s26 + $0x1e0] sm:$0xff] }
 0x2ff   : >> { %2116 = vst [vmem:[%s2834_s21 + $0x1d0] sm:$0xff] %v2115_v62  ;;  %2118 = vst [vmem:[%s2834_s21 + $0x1d8] sm:$0xff] %v2117_v63  ;;  %v2121_v2 = vld [vmem:[%s2838_s26 + $0x1e8] sm:$0xff]  ;;  %v2123_v3 = vld [vmem:[%s2838_s26 + $0x1f0] sm:$0xff] }
 0x300   : >> { %2120 = vst [vmem:[%s2834_s21 + $0x1e0] sm:$0xff] %v2119_v0  ;;  %2122 = vst [vmem:[%s2834_s21 + $0x1e8] sm:$0xff] %v2121_v2  ;;  %v2125_v4 = vld [vmem:[%s2838_s26 + $0x1f8] sm:$0xff]  ;;  %s3683_s26 = smov %s3547_s7 }
 0x301   : >> { %2124 = vst [vmem:[%s2834_s21 + $0x1f0] sm:$0xff] %v2123_v3  ;;  %2126 = vst [vmem:[%s2834_s21 + $0x1f8] sm:$0xff] %v2125_v4  ;;  %s3682_s21 = smov %s3550_s8 }
 0x302 PF: > { %s3655_s9 = sand.u32 63, %s3689_s15   ;;  %s2468_s10 = sshll.u32 %s3480_s27, 9 }
 0x303   : > { %s2138_s11 = scalar_lea.vmem %s3264_s18, %s2468_s10 [#allocation2]   ;;  %s2140_s12 = scalar_lea.vmem %s3474_s23, %s2468_s10  }
 0x304   : > { %p2395_p13 = scmp.le.s32.totalorder %s3655_s9, 0 }
 0x305   : > { %s2848_s13 = smov (!%p2395_p13), %s2140_s12   ;;  %s2852_s14 = smov (!%p2395_p13), %s2138_s11  }
 0x306   : > { %2231 = sbr.rel (%p2395_p13) target bundleno = 791 (0x317), region = 135  ;;  %s2856_s16 = smov (!%p2395_p13), 0  }
 0x307   : > { %s2860_s17 = smov (!%p2395_p13), 0  }
 0x30d LB: >> { %v2150_v8 = vld [vmem:[%s2854_s14] sm:$0xff]  ;;  %s2152_s15 = sadd.s32 1, %s2858_s16  ;;  %s2144_s17 = sadd.s32 1, %s2862_s17   ;;  %s2862_s17 = sphi %s2860_s17, %s2144_s17   ;;  %s2858_s16 = sphi %s2856_s16, %s2857_s16   ;;  %s2854_s14 = sphi %s2852_s14, %s2157_s14   ;;  %s2850_s13 = sphi %s2848_s13, %s2158_s13  }
 0x30e   : >> { %2151 = vst [vmem:[%s2850_s13] sm:$0xff] %v2150_v8  ;;  %p2153_p0 = scmp.ge.s32.totalorder %s2152_s15, %s3655_s9  ;;  %p2143_p1 = scmp.ge.s32.totalorder %s2144_s17, %s3655_s9 }
 0x310   : >> { %s3693_s15 = smov (%p2153_p0, %s2152_s15), 0  ;;  %2146 = sbr.rel (!%p2143_p1) target bundleno = 781 (0x30d), region = 141 }
 0x311   : >> { %s2396_s18 = sshll.u32 %s3693_s15, 3  ;;  %s2857_s16 = smov %s3693_s15  }
 0x312   : >> { %s2157_s14 = scalar_lea.vmem %s2138_s11, %s2396_s18 [#allocation2]   ;;  %s2158_s13 = scalar_lea.vmem %s2140_s12, %s2396_s18  }
 0x317 PF: > { %p12_p2 = scmp.ge.s32.totalorder %s2912_s22, 4   ;;  %s3685_s18 = smov %s2826_s19 }
 0x318   : > { %s3686_s19 = smov %s2920_s25  ;;  %s3687_s20 = smov %s2912_s22 }
 0x319   :  { %14 = sbr.rel (!%p12_p2) target bundleno = 2 (0x2), region = 152 }

</bundles_post_ra>
